<compile_context>
chip_gen: v6e
topology: v6e:2x2x1
jax: 0.10.0
libtpu: 0.0.40
codegen_flags: <defaults>
</compile_context>

<pallas_src>
import jax
import jax.numpy as jnp
from jax import lax
from jax.experimental import pallas as pl
from jax.experimental.pallas import tpu as pltpu


def _sum11(a):
    # full 2-D reduction kept as a (1, 1) array (stay in vector land)
    return jnp.sum(jnp.sum(a, axis=1, keepdims=True), axis=0, keepdims=True)


def _pick_group_block(n, m, d):
    """Pick G = groups per grid step.

    Constraints:
      * G divides n (no ragged trailing block),
      * >= 2 grid steps when n >= 2 (so v7x megacore can split steps across its 2 TCs),
      * double-buffered input block stays small vs. scoped VMEM (v7x: ~32 MiB default),
      * modest cap so the in-kernel static group loop stays small.
    """
    bytes_per_group = m * d * 4 + 2 * m * 4          # f32 features + two int32 label views
    max_by_vmem = max(1, (4 * 1024 * 1024) // max(bytes_per_group, 1))
    cap = max(1, min(max_by_vmem, 8, n // 2 if n >= 2 else 1))
    g = 1
    for cand in range(1, cap + 1):
        if n % cand == 0:
            g = cand
    return g


def _make_kernel(G, m, d, margin):
    margin = float(margin)             # Python float -> literal, not a captured constant
    _CDIMS = (((1,), (1,)), ((), ()))  # contract feature dim of both operands
    use_fori = m > 16                  # small m: full static unroll with static row slices
    p_unroll = 4 if m <= 64 else 2     # cap unroll to bound vreg pressure at large m

    inv_m2 = 1.0 / float(m * m)
    inv_m = 1.0 / float(m)

    def kernel(x_ref, labc_ref, labr_ref, out_ref, *scratch):
        dphp_ref = scratch[0] if scratch else None

        # hoisted constants (JAX does not CSE broadcast/iota -- don't re-emit per group)
        eye = (lax.broadcasted_iota(jnp.int32, (m, m), 0)
               == lax.broadcasted_iota(jnp.int32, (m, m), 1))
        zeros_row = jnp.zeros((1, m), jnp.float32)

        rows = []
        for g in range(G):                       # static loop over groups in this block
            x = x_ref[g]                         # (m, d) caller dtype (f32/bf16)
            labc = labc_ref[g]                   # (m, 1) int32
            labr = labr_ref[g]                   # (1, m) int32
            hp = labc == labr                    # (m, m) positive-pair mask (incl. diag)

            # gram on the MXU; squared norms come from its diagonal (no ones-matmul),
            # which also makes dist exactly symmetric.
            gram = lax.dot_general(x, x, _CDIMS, preferred_element_type=jnp.float32,
                                   precision=lax.Precision.HIGHEST)      # (m, m)
            gdiag = jnp.where(eye, gram, 0.0)
            x2_col = jnp.sum(gdiag, axis=1, keepdims=True)               # (m, 1) ||x_a||^2
            x2_row = jnp.sum(gdiag, axis=0, keepdims=True)               # (1, m) ||x_q||^2
            dist = jnp.sqrt(jnp.maximum(x2_col + x2_row - 2.0 * gram, 0.0))

            mean_dist = _sum11(dist) * inv_m2                            # (1, 1)

            # hard positive (max over same-label) / hard negative (min over diff-label).
            # dist_neg is hoisted and reused by the full-triplet loop (hn folded in).
            dphp = jnp.where(hp, dist, -1e30)                            # positives else -inf-ish
            dist_neg = jnp.where(hp, 1e30, dist)                         # negatives else +inf-ish
            hard_hp = jnp.max(dphp, axis=1, keepdims=True)
            hard_hn = jnp.min(dist_neg, axis=1, keepdims=True)
            hard_mean = _sum11(jnp.maximum(margin + hard_hp - hard_hn, 0.0)) * inv_m

            # Full triplet loss, re-indexed via the symmetry of dist / hp:
            #   sum_{p,a,q} relu(margin + dphp[p, q] - dist_neg[a, q])
            # is exactly the original sum over (anchor, positive, negative) triples,
            # but only needs a ROW of dphp per iteration (broadcast over sublanes).
            # Both masks are folded via the +/-1e30 sentinels (keep these in f32).
            def tri_acc(d_row, facc, cacc):
                tri = jnp.maximum(margin + d_row - dist_neg, 0.0)        # (m, m)
                facc = facc + jnp.sum(tri, axis=0, keepdims=True)        # XLU sublane reduce
                cacc = cacc + jnp.sum((tri > 0.0).astype(jnp.float32),
                                      axis=0, keepdims=True)
                return facc, cacc

            if not use_fori:
                # small m: full static unroll, static sublane row slices of the value
                facc, cacc = zeros_row, zeros_row
                for p in range(m):
                    facc, cacc = tri_acc(dphp[p:p + 1, :], facc, cacc)
            else:
                # large m: stage dphp in VMEM scratch, dynamic row loads in a fori loop
                dphp_ref[...] = dphp

                def body(p, carry):
                    facc, cacc = carry
                    d_row = dphp_ref[pl.ds(p, 1), :]                     # (1, m)
                    return tri_acc(d_row, facc, cacc)

                facc, cacc = lax.fori_loop(0, m, body, (zeros_row, zeros_row),
                                           unroll=p_unroll)

            full_sum = jnp.sum(facc, axis=1, keepdims=True)              # (1, 1)
            full_cnt = jnp.sum(cacc, axis=1, keepdims=True)              # (1, 1)
            full_mean = jnp.where(full_cnt > 0.0,
                                  full_sum / jnp.maximum(full_cnt, 1.0),
                                  jnp.zeros_like(full_sum))

            row = jnp.concatenate([full_mean, hard_mean, mean_dist, full_cnt], axis=1)
            rows.append(row.reshape(1, 1, 4))

        # one batched (G, 1, 4) store per grid step
        out_ref[...] = jnp.concatenate(rows, axis=0) if G > 1 else rows[0]

    return kernel


def triplet_loss_pallas(feature, label, margin):
    n, m, d = feature.shape
    label = label.astype(jnp.int32)
    lab_col = label.reshape(n, m, 1)
    lab_row = label.reshape(n, 1, m)

    G = _pick_group_block(n, m, d)
    kernel = _make_kernel(G, m, d, float(margin))
    scratch = [pltpu.VMEM((m, m), jnp.float32)] if m > 16 else []

    out = pl.pallas_call(
        kernel,
        out_shape=jax.ShapeDtypeStruct((n, 1, 4), jnp.float32),
        grid_spec=pltpu.PrefetchScalarGridSpec(
            num_scalar_prefetch=0,
            grid=(n // G,),
            in_specs=[
                pl.BlockSpec((G, m, d), lambda i: (i, 0, 0)),
                pl.BlockSpec((G, m, 1), lambda i: (i, 0, 0)),
                pl.BlockSpec((G, 1, m), lambda i: (i, 0, 0)),
            ],
            out_specs=pl.BlockSpec((G, 1, 4), lambda i: (i, 0, 0)),
            scratch_shapes=scratch,
        ),
        compiler_params=pltpu.CompilerParams(
            dimension_semantics=("parallel",)),
    )(feature, lab_col, lab_row)

    out = out.reshape(n, 4)
    return out[:, 0], out[:, 1], out[:, 2], out[:, 3]


def triplet_loss_ref(feature, label, margin):
    # pure-JAX reference matching the PyTorch forward (labels balanced per row)
    hp = (label[:, :, None] == label[:, None, :])
    hn = ~hp
    f32 = feature.astype(jnp.float32)
    x2 = jnp.sum(f32 * f32, axis=2)
    g = jnp.einsum('nmd,nkd->nmk', f32, f32, precision=lax.Precision.HIGHEST)
    dist = jnp.sqrt(jnp.maximum(x2[:, :, None] + x2[:, None, :] - 2.0 * g, 0.0))
    mean_dist = jnp.mean(dist, axis=(1, 2))
    hard_hp = jnp.max(jnp.where(hp, dist, -jnp.inf), axis=2)
    hard_hn = jnp.min(jnp.where(hn, dist, jnp.inf), axis=2)
    hard_mean = jnp.mean(jnp.maximum(margin + hard_hp - hard_hn, 0.0), axis=1)
    full = (jnp.maximum(margin + dist[:, :, :, None] - dist[:, :, None, :], 0.0)
            * hp[:, :, :, None] * hn[:, :, None, :])
    full_sum = jnp.sum(full, axis=(1, 2, 3))
    full_num = jnp.sum((full != 0).astype(jnp.float32), axis=(1, 2, 3))
    full_mean = jnp.where(full_num > 0, full_sum / jnp.maximum(full_num, 1.0), 0.0)
    return full_mean, hard_mean, mean_dist, full_num


if __name__ == "__main__":
    key = jax.random.PRNGKey(0)
    n, m, d = 4, 8, 32          # parts, samples-per-part, feature dim
    margin = 0.2

    kf, _ = jax.random.split(key)
    feature = jax.random.normal(kf, (n, m, d), dtype=jnp.float32)
    # balanced labels per row (required by the original masked_select().view(n, m, -1))
    label = jnp.tile(jnp.array([0, 0, 0, 0, 1, 1, 1, 1], dtype=jnp.int32)[None, :], (n, 1))

    outs = triplet_loss_pallas(feature, label, margin)
    outs = jax.block_until_ready(outs)
    refs = triplet_loss_ref(feature, label, margin)

    full_mean, hard_mean, mean_dist, full_num = outs
    r_full, r_hard, r_dist, r_num = refs
    assert jnp.allclose(full_mean, r_full, rtol=1e-2, atol=1e-2), (full_mean, r_full)
    assert jnp.allclose(hard_mean, r_hard, rtol=1e-2, atol=1e-2), (hard_mean, r_hard)
    assert jnp.allclose(mean_dist, r_dist, rtol=1e-2, atol=1e-2), (mean_dist, r_dist)
    # counts are integer-valued; allow a couple of borderline (relu ~= 0) triples to
    # differ if the TPU matmul precision differs slightly from the f32 reference
    assert jnp.all(jnp.abs(full_num - r_num) <= 2.0), (full_num, r_num)

    print("KERNEL_OK")
</pallas_src>

<mosaic_0001>
module attributes {stable_mosaic.version = 11 : i64} {
  func.func @kernel(%arg0: i32, %arg1: memref<2x8x32xf32, #tpu.memory_space<vmem>>, %arg2: memref<2x8x1xi32, #tpu.memory_space<vmem>>, %arg3: memref<2x1x8xi32, #tpu.memory_space<vmem>>, %arg4: memref<2x1x4xf32, #tpu.memory_space<vmem>>) attributes {dimension_semantics = [#tpu.dimension_semantics<parallel>], iteration_bounds = array<i64: 2>, scalar_prefetch = 0 : i64, scratch_operands = 0 : i64, tpu.core_type = #tpu.core_type<tc>, window_params = [{transform_indices = @transform_0, window_bounds = array<i64: 2, 8, 32>}, {transform_indices = @transform_1, window_bounds = array<i64: 2, 8, 1>}, {transform_indices = @transform_2, window_bounds = array<i64: 2, 1, 8>}, {transform_indices = @transform_3, window_bounds = array<i64: 2, 1, 4>}]} {
    %0 = tpu.iota {dimensions = array<i32: 0>} : vector<8x8xi32>
    %1 = tpu.iota {dimensions = array<i32: 1>} : vector<8x8xi32>
    %2 = arith.cmpi eq, %0, %1 : vector<8x8xi32>
    %cst = arith.constant 0.000000e+00 : f32
    %3 = vector.broadcast %cst : f32 to vector<1x8xf32>
    %c0 = arith.constant 0 : index
    %c0_0 = arith.constant 0 : index
    %c0_1 = arith.constant 0 : index
    %4 = vector.load %arg1[%c0, %c0_0, %c0_1] : memref<2x8x32xf32, #tpu.memory_space<vmem>>, vector<1x8x32xf32>
    %5 = vector.shape_cast %4 : vector<1x8x32xf32> to vector<8x32xf32>
    %c0_2 = arith.constant 0 : index
    %c0_3 = arith.constant 0 : index
    %c0_4 = arith.constant 0 : index
    %6 = vector.load %arg2[%c0_2, %c0_3, %c0_4] : memref<2x8x1xi32, #tpu.memory_space<vmem>>, vector<1x8x1xi32>
    %7 = vector.shape_cast %6 : vector<1x8x1xi32> to vector<8x1xi32>
    %c0_5 = arith.constant 0 : index
    %c0_6 = arith.constant 0 : index
    %c0_7 = arith.constant 0 : index
    %8 = vector.load %arg3[%c0_5, %c0_6, %c0_7] : memref<2x1x8xi32, #tpu.memory_space<vmem>>, vector<1x1x8xi32>
    %9 = vector.shape_cast %8 : vector<1x1x8xi32> to vector<1x8xi32>
    %10 = vector.broadcast %7 : vector<8x1xi32> to vector<8x8xi32>
    %11 = vector.broadcast %9 : vector<1x8xi32> to vector<8x8xi32>
    %12 = arith.cmpi eq, %10, %11 : vector<8x8xi32>
    %cst_8 = arith.constant dense<0.000000e+00> : vector<8x8xf32>
    %13 = tpu.matmul %5, %5, %cst_8 {dimension_numbers = #tpu.dot_dimension_numbers<[1], [1], [0], [0], [0, 0, 1, 0], [], []>, precision = #tpu.contract_precision<fp32>} : vector<8x32xf32>, vector<8x32xf32>, vector<8x8xf32> -> vector<8x8xf32>
    %cst_9 = arith.constant 0.000000e+00 : f32
    %14 = vector.broadcast %cst_9 : f32 to vector<8x8xf32>
    %15 = arith.select %2, %13, %14 : vector<8x8xi1>, vector<8x8xf32>
    %cst_10 = arith.constant dense<0.000000e+00> : vector<8xf32>
    %16 = vector.multi_reduction <add>, %15, %cst_10 [1] : vector<8x8xf32> to vector<8xf32>
    %17 = vector.shape_cast %16 : vector<8xf32> to vector<8x1xf32>
    %cst_11 = arith.constant dense<0.000000e+00> : vector<8xf32>
    %18 = vector.multi_reduction <add>, %15, %cst_11 [0] : vector<8x8xf32> to vector<8xf32>
    %19 = vector.shape_cast %18 : vector<8xf32> to vector<1x8xf32>
    %20 = vector.broadcast %17 : vector<8x1xf32> to vector<8x8xf32>
    %21 = vector.broadcast %19 : vector<1x8xf32> to vector<8x8xf32>
    %22 = arith.addf %20, %21 : vector<8x8xf32>
    %cst_12 = arith.constant 2.000000e+00 : f32
    %23 = vector.broadcast %cst_12 : f32 to vector<8x8xf32>
    %24 = arith.mulf %23, %13 : vector<8x8xf32>
    %25 = arith.subf %22, %24 : vector<8x8xf32>
    %cst_13 = arith.constant 0.000000e+00 : f32
    %26 = vector.broadcast %cst_13 : f32 to vector<8x8xf32>
    %27 = arith.maximumf %25, %26 : vector<8x8xf32>
    %28 = math.sqrt %27 : vector<8x8xf32>
    %cst_14 = arith.constant dense<0.000000e+00> : vector<8xf32>
    %29 = vector.multi_reduction <add>, %28, %cst_14 [1] : vector<8x8xf32> to vector<8xf32>
    %30 = vector.shape_cast %29 : vector<8xf32> to vector<8x1xf32>
    %cst_15 = arith.constant dense<0.000000e+00> : vector<1xf32>
    %31 = vector.multi_reduction <add>, %30, %cst_15 [0] : vector<8x1xf32> to vector<1xf32>
    %32 = vector.shape_cast %31 : vector<1xf32> to vector<1x1xf32>
    %cst_16 = arith.constant 1.562500e-02 : f32
    %33 = vector.broadcast %cst_16 : f32 to vector<1x1xf32>
    %34 = arith.mulf %32, %33 : vector<1x1xf32>
    %cst_17 = arith.constant -1.000000e+30 : f32
    %35 = vector.broadcast %cst_17 : f32 to vector<8x8xf32>
    %36 = arith.select %12, %28, %35 : vector<8x8xi1>, vector<8x8xf32>
    %cst_18 = arith.constant 1.000000e+30 : f32
    %37 = vector.broadcast %cst_18 : f32 to vector<8x8xf32>
    %38 = arith.select %12, %37, %28 : vector<8x8xi1>, vector<8x8xf32>
    %cst_19 = arith.constant dense<0xFF800000> : vector<8xf32>
    %39 = vector.multi_reduction <maximumf>, %36, %cst_19 [1] : vector<8x8xf32> to vector<8xf32>
    %40 = vector.shape_cast %39 : vector<8xf32> to vector<8x1xf32>
    %cst_20 = arith.constant dense<0x7F800000> : vector<8xf32>
    %41 = vector.multi_reduction <minimumf>, %38, %cst_20 [1] : vector<8x8xf32> to vector<8xf32>
    %42 = vector.shape_cast %41 : vector<8xf32> to vector<8x1xf32>
    %cst_21 = arith.constant 2.000000e-01 : f32
    %43 = vector.broadcast %cst_21 : f32 to vector<8x1xf32>
    %44 = arith.addf %43, %40 : vector<8x1xf32>
    %45 = arith.subf %44, %42 : vector<8x1xf32>
    %cst_22 = arith.constant 0.000000e+00 : f32
    %46 = vector.broadcast %cst_22 : f32 to vector<8x1xf32>
    %47 = arith.maximumf %45, %46 : vector<8x1xf32>
    %cst_23 = arith.constant dense<0.000000e+00> : vector<8xf32>
    %48 = vector.multi_reduction <add>, %47, %cst_23 [1] : vector<8x1xf32> to vector<8xf32>
    %49 = vector.shape_cast %48 : vector<8xf32> to vector<8x1xf32>
    %cst_24 = arith.constant dense<0.000000e+00> : vector<1xf32>
    %50 = vector.multi_reduction <add>, %49, %cst_24 [0] : vector<8x1xf32> to vector<1xf32>
    %51 = vector.shape_cast %50 : vector<1xf32> to vector<1x1xf32>
    %cst_25 = arith.constant 1.250000e-01 : f32
    %52 = vector.broadcast %cst_25 : f32 to vector<1x1xf32>
    %53 = arith.mulf %51, %52 : vector<1x1xf32>
    %54 = vector.extract_strided_slice %36 {offsets = [0, 0], sizes = [1, 8], strides = [1, 1]} : vector<8x8xf32> to vector<1x8xf32>
    %cst_26 = arith.constant 2.000000e-01 : f32
    %55 = vector.broadcast %cst_26 : f32 to vector<1x8xf32>
    %56 = arith.addf %55, %54 : vector<1x8xf32>
    %57 = vector.broadcast %56 : vector<1x8xf32> to vector<8x8xf32>
    %58 = arith.subf %57, %38 : vector<8x8xf32>
    %cst_27 = arith.constant 0.000000e+00 : f32
    %59 = vector.broadcast %cst_27 : f32 to vector<8x8xf32>
    %60 = arith.maximumf %58, %59 : vector<8x8xf32>
    %cst_28 = arith.constant dense<0.000000e+00> : vector<8xf32>
    %61 = vector.multi_reduction <add>, %60, %cst_28 [0] : vector<8x8xf32> to vector<8xf32>
    %62 = vector.shape_cast %61 : vector<8xf32> to vector<1x8xf32>
    %63 = arith.addf %3, %62 : vector<1x8xf32>
    %cst_29 = arith.constant 0.000000e+00 : f32
    %64 = vector.broadcast %cst_29 : f32 to vector<8x8xf32>
    %65 = arith.cmpf ogt, %60, %64 : vector<8x8xf32>
    %66 = arith.extui %65 : vector<8x8xi1> to vector<8x8xi32>
    %67 = arith.sitofp %66 : vector<8x8xi32> to vector<8x8xf32>
    %cst_30 = arith.constant dense<0.000000e+00> : vector<8xf32>
    %68 = vector.multi_reduction <add>, %67, %cst_30 [0] : vector<8x8xf32> to vector<8xf32>
    %69 = vector.shape_cast %68 : vector<8xf32> to vector<1x8xf32>
    %70 = arith.addf %3, %69 : vector<1x8xf32>
    %71 = vector.extract_strided_slice %36 {offsets = [1, 0], sizes = [1, 8], strides = [1, 1]} : vector<8x8xf32> to vector<1x8xf32>
    %cst_31 = arith.constant 2.000000e-01 : f32
    %72 = vector.broadcast %cst_31 : f32 to vector<1x8xf32>
    %73 = arith.addf %72, %71 : vector<1x8xf32>
    %74 = vector.broadcast %73 : vector<1x8xf32> to vector<8x8xf32>
    %75 = arith.subf %74, %38 : vector<8x8xf32>
    %cst_32 = arith.constant 0.000000e+00 : f32
    %76 = vector.broadcast %cst_32 : f32 to vector<8x8xf32>
    %77 = arith.maximumf %75, %76 : vector<8x8xf32>
    %cst_33 = arith.constant dense<0.000000e+00> : vector<8xf32>
    %78 = vector.multi_reduction <add>, %77, %cst_33 [0] : vector<8x8xf32> to vector<8xf32>
    %79 = vector.shape_cast %78 : vector<8xf32> to vector<1x8xf32>
    %80 = arith.addf %63, %79 : vector<1x8xf32>
    %cst_34 = arith.constant 0.000000e+00 : f32
    %81 = vector.broadcast %cst_34 : f32 to vector<8x8xf32>
    %82 = arith.cmpf ogt, %77, %81 : vector<8x8xf32>
    %83 = arith.extui %82 : vector<8x8xi1> to vector<8x8xi32>
    %84 = arith.sitofp %83 : vector<8x8xi32> to vector<8x8xf32>
    %cst_35 = arith.constant dense<0.000000e+00> : vector<8xf32>
    %85 = vector.multi_reduction <add>, %84, %cst_35 [0] : vector<8x8xf32> to vector<8xf32>
    %86 = vector.shape_cast %85 : vector<8xf32> to vector<1x8xf32>
    %87 = arith.addf %70, %86 : vector<1x8xf32>
    %88 = vector.extract_strided_slice %36 {offsets = [2, 0], sizes = [1, 8], strides = [1, 1]} : vector<8x8xf32> to vector<1x8xf32>
    %cst_36 = arith.constant 2.000000e-01 : f32
    %89 = vector.broadcast %cst_36 : f32 to vector<1x8xf32>
    %90 = arith.addf %89, %88 : vector<1x8xf32>
    %91 = vector.broadcast %90 : vector<1x8xf32> to vector<8x8xf32>
    %92 = arith.subf %91, %38 : vector<8x8xf32>
    %cst_37 = arith.constant 0.000000e+00 : f32
    %93 = vector.broadcast %cst_37 : f32 to vector<8x8xf32>
    %94 = arith.maximumf %92, %93 : vector<8x8xf32>
    %cst_38 = arith.constant dense<0.000000e+00> : vector<8xf32>
    %95 = vector.multi_reduction <add>, %94, %cst_38 [0] : vector<8x8xf32> to vector<8xf32>
    %96 = vector.shape_cast %95 : vector<8xf32> to vector<1x8xf32>
    %97 = arith.addf %80, %96 : vector<1x8xf32>
    %cst_39 = arith.constant 0.000000e+00 : f32
    %98 = vector.broadcast %cst_39 : f32 to vector<8x8xf32>
    %99 = arith.cmpf ogt, %94, %98 : vector<8x8xf32>
    %100 = arith.extui %99 : vector<8x8xi1> to vector<8x8xi32>
    %101 = arith.sitofp %100 : vector<8x8xi32> to vector<8x8xf32>
    %cst_40 = arith.constant dense<0.000000e+00> : vector<8xf32>
    %102 = vector.multi_reduction <add>, %101, %cst_40 [0] : vector<8x8xf32> to vector<8xf32>
    %103 = vector.shape_cast %102 : vector<8xf32> to vector<1x8xf32>
    %104 = arith.addf %87, %103 : vector<1x8xf32>
    %105 = vector.extract_strided_slice %36 {offsets = [3, 0], sizes = [1, 8], strides = [1, 1]} : vector<8x8xf32> to vector<1x8xf32>
    %cst_41 = arith.constant 2.000000e-01 : f32
    %106 = vector.broadcast %cst_41 : f32 to vector<1x8xf32>
    %107 = arith.addf %106, %105 : vector<1x8xf32>
    %108 = vector.broadcast %107 : vector<1x8xf32> to vector<8x8xf32>
    %109 = arith.subf %108, %38 : vector<8x8xf32>
    %cst_42 = arith.constant 0.000000e+00 : f32
    %110 = vector.broadcast %cst_42 : f32 to vector<8x8xf32>
    %111 = arith.maximumf %109, %110 : vector<8x8xf32>
    %cst_43 = arith.constant dense<0.000000e+00> : vector<8xf32>
    %112 = vector.multi_reduction <add>, %111, %cst_43 [0] : vector<8x8xf32> to vector<8xf32>
    %113 = vector.shape_cast %112 : vector<8xf32> to vector<1x8xf32>
    %114 = arith.addf %97, %113 : vector<1x8xf32>
    %cst_44 = arith.constant 0.000000e+00 : f32
    %115 = vector.broadcast %cst_44 : f32 to vector<8x8xf32>
    %116 = arith.cmpf ogt, %111, %115 : vector<8x8xf32>
    %117 = arith.extui %116 : vector<8x8xi1> to vector<8x8xi32>
    %118 = arith.sitofp %117 : vector<8x8xi32> to vector<8x8xf32>
    %cst_45 = arith.constant dense<0.000000e+00> : vector<8xf32>
    %119 = vector.multi_reduction <add>, %118, %cst_45 [0] : vector<8x8xf32> to vector<8xf32>
    %120 = vector.shape_cast %119 : vector<8xf32> to vector<1x8xf32>
    %121 = arith.addf %104, %120 : vector<1x8xf32>
    %122 = vector.extract_strided_slice %36 {offsets = [4, 0], sizes = [1, 8], strides = [1, 1]} : vector<8x8xf32> to vector<1x8xf32>
    %cst_46 = arith.constant 2.000000e-01 : f32
    %123 = vector.broadcast %cst_46 : f32 to vector<1x8xf32>
    %124 = arith.addf %123, %122 : vector<1x8xf32>
    %125 = vector.broadcast %124 : vector<1x8xf32> to vector<8x8xf32>
    %126 = arith.subf %125, %38 : vector<8x8xf32>
    %cst_47 = arith.constant 0.000000e+00 : f32
    %127 = vector.broadcast %cst_47 : f32 to vector<8x8xf32>
    %128 = arith.maximumf %126, %127 : vector<8x8xf32>
    %cst_48 = arith.constant dense<0.000000e+00> : vector<8xf32>
    %129 = vector.multi_reduction <add>, %128, %cst_48 [0] : vector<8x8xf32> to vector<8xf32>
    %130 = vector.shape_cast %129 : vector<8xf32> to vector<1x8xf32>
    %131 = arith.addf %114, %130 : vector<1x8xf32>
    %cst_49 = arith.constant 0.000000e+00 : f32
    %132 = vector.broadcast %cst_49 : f32 to vector<8x8xf32>
    %133 = arith.cmpf ogt, %128, %132 : vector<8x8xf32>
    %134 = arith.extui %133 : vector<8x8xi1> to vector<8x8xi32>
    %135 = arith.sitofp %134 : vector<8x8xi32> to vector<8x8xf32>
    %cst_50 = arith.constant dense<0.000000e+00> : vector<8xf32>
    %136 = vector.multi_reduction <add>, %135, %cst_50 [0] : vector<8x8xf32> to vector<8xf32>
    %137 = vector.shape_cast %136 : vector<8xf32> to vector<1x8xf32>
    %138 = arith.addf %121, %137 : vector<1x8xf32>
    %139 = vector.extract_strided_slice %36 {offsets = [5, 0], sizes = [1, 8], strides = [1, 1]} : vector<8x8xf32> to vector<1x8xf32>
    %cst_51 = arith.constant 2.000000e-01 : f32
    %140 = vector.broadcast %cst_51 : f32 to vector<1x8xf32>
    %141 = arith.addf %140, %139 : vector<1x8xf32>
    %142 = vector.broadcast %141 : vector<1x8xf32> to vector<8x8xf32>
    %143 = arith.subf %142, %38 : vector<8x8xf32>
    %cst_52 = arith.constant 0.000000e+00 : f32
    %144 = vector.broadcast %cst_52 : f32 to vector<8x8xf32>
    %145 = arith.maximumf %143, %144 : vector<8x8xf32>
    %cst_53 = arith.constant dense<0.000000e+00> : vector<8xf32>
    %146 = vector.multi_reduction <add>, %145, %cst_53 [0] : vector<8x8xf32> to vector<8xf32>
    %147 = vector.shape_cast %146 : vector<8xf32> to vector<1x8xf32>
    %148 = arith.addf %131, %147 : vector<1x8xf32>
    %cst_54 = arith.constant 0.000000e+00 : f32
    %149 = vector.broadcast %cst_54 : f32 to vector<8x8xf32>
    %150 = arith.cmpf ogt, %145, %149 : vector<8x8xf32>
    %151 = arith.extui %150 : vector<8x8xi1> to vector<8x8xi32>
    %152 = arith.sitofp %151 : vector<8x8xi32> to vector<8x8xf32>
    %cst_55 = arith.constant dense<0.000000e+00> : vector<8xf32>
    %153 = vector.multi_reduction <add>, %152, %cst_55 [0] : vector<8x8xf32> to vector<8xf32>
    %154 = vector.shape_cast %153 : vector<8xf32> to vector<1x8xf32>
    %155 = arith.addf %138, %154 : vector<1x8xf32>
    %156 = vector.extract_strided_slice %36 {offsets = [6, 0], sizes = [1, 8], strides = [1, 1]} : vector<8x8xf32> to vector<1x8xf32>
    %cst_56 = arith.constant 2.000000e-01 : f32
    %157 = vector.broadcast %cst_56 : f32 to vector<1x8xf32>
    %158 = arith.addf %157, %156 : vector<1x8xf32>
    %159 = vector.broadcast %158 : vector<1x8xf32> to vector<8x8xf32>
    %160 = arith.subf %159, %38 : vector<8x8xf32>
    %cst_57 = arith.constant 0.000000e+00 : f32
    %161 = vector.broadcast %cst_57 : f32 to vector<8x8xf32>
    %162 = arith.maximumf %160, %161 : vector<8x8xf32>
    %cst_58 = arith.constant dense<0.000000e+00> : vector<8xf32>
    %163 = vector.multi_reduction <add>, %162, %cst_58 [0] : vector<8x8xf32> to vector<8xf32>
    %164 = vector.shape_cast %163 : vector<8xf32> to vector<1x8xf32>
    %165 = arith.addf %148, %164 : vector<1x8xf32>
    %cst_59 = arith.constant 0.000000e+00 : f32
    %166 = vector.broadcast %cst_59 : f32 to vector<8x8xf32>
    %167 = arith.cmpf ogt, %162, %166 : vector<8x8xf32>
    %168 = arith.extui %167 : vector<8x8xi1> to vector<8x8xi32>
    %169 = arith.sitofp %168 : vector<8x8xi32> to vector<8x8xf32>
    %cst_60 = arith.constant dense<0.000000e+00> : vector<8xf32>
    %170 = vector.multi_reduction <add>, %169, %cst_60 [0] : vector<8x8xf32> to vector<8xf32>
    %171 = vector.shape_cast %170 : vector<8xf32> to vector<1x8xf32>
    %172 = arith.addf %155, %171 : vector<1x8xf32>
    %173 = vector.extract_strided_slice %36 {offsets = [7, 0], sizes = [1, 8], strides = [1, 1]} : vector<8x8xf32> to vector<1x8xf32>
    %cst_61 = arith.constant 2.000000e-01 : f32
    %174 = vector.broadcast %cst_61 : f32 to vector<1x8xf32>
    %175 = arith.addf %174, %173 : vector<1x8xf32>
    %176 = vector.broadcast %175 : vector<1x8xf32> to vector<8x8xf32>
    %177 = arith.subf %176, %38 : vector<8x8xf32>
    %cst_62 = arith.constant 0.000000e+00 : f32
    %178 = vector.broadcast %cst_62 : f32 to vector<8x8xf32>
    %179 = arith.maximumf %177, %178 : vector<8x8xf32>
    %cst_63 = arith.constant dense<0.000000e+00> : vector<8xf32>
    %180 = vector.multi_reduction <add>, %179, %cst_63 [0] : vector<8x8xf32> to vector<8xf32>
    %181 = vector.shape_cast %180 : vector<8xf32> to vector<1x8xf32>
    %182 = arith.addf %165, %181 : vector<1x8xf32>
    %cst_64 = arith.constant 0.000000e+00 : f32
    %183 = vector.broadcast %cst_64 : f32 to vector<8x8xf32>
    %184 = arith.cmpf ogt, %179, %183 : vector<8x8xf32>
    %185 = arith.extui %184 : vector<8x8xi1> to vector<8x8xi32>
    %186 = arith.sitofp %185 : vector<8x8xi32> to vector<8x8xf32>
    %cst_65 = arith.constant dense<0.000000e+00> : vector<8xf32>
    %187 = vector.multi_reduction <add>, %186, %cst_65 [0] : vector<8x8xf32> to vector<8xf32>
    %188 = vector.shape_cast %187 : vector<8xf32> to vector<1x8xf32>
    %189 = arith.addf %172, %188 : vector<1x8xf32>
    %cst_66 = arith.constant dense<0.000000e+00> : vector<1xf32>
    %190 = vector.multi_reduction <add>, %182, %cst_66 [1] : vector<1x8xf32> to vector<1xf32>
    %191 = vector.shape_cast %190 : vector<1xf32> to vector<1x1xf32>
    %cst_67 = arith.constant dense<0.000000e+00> : vector<1xf32>
    %192 = vector.multi_reduction <add>, %189, %cst_67 [1] : vector<1x8xf32> to vector<1xf32>
    %193 = vector.shape_cast %192 : vector<1xf32> to vector<1x1xf32>
    %cst_68 = arith.constant 0.000000e+00 : f32
    %194 = vector.broadcast %cst_68 : f32 to vector<1x1xf32>
    %195 = arith.cmpf ogt, %193, %194 : vector<1x1xf32>
    %cst_69 = arith.constant 1.000000e+00 : f32
    %196 = vector.broadcast %cst_69 : f32 to vector<1x1xf32>
    %197 = arith.maximumf %193, %196 : vector<1x1xf32>
    %198 = arith.divf %191, %197 : vector<1x1xf32>
    %cst_70 = arith.constant 0.000000e+00 : f32
    %199 = vector.broadcast %cst_70 : f32 to vector<1x1xf32>
    %200 = arith.select %195, %198, %199 : vector<1x1xi1>, vector<1x1xf32>
    %201 = tpu.concatenate %200, %53, %34, %193 in 1 : vector<1x1xf32>, vector<1x1xf32>, vector<1x1xf32>, vector<1x1xf32> -> vector<1x4xf32>
    %202 = vector.shape_cast %201 : vector<1x4xf32> to vector<1x1x4xf32>
    %c1 = arith.constant 1 : index
    %c0_71 = arith.constant 0 : index
    %c0_72 = arith.constant 0 : index
    %203 = vector.load %arg1[%c1, %c0_71, %c0_72] : memref<2x8x32xf32, #tpu.memory_space<vmem>>, vector<1x8x32xf32>
    %204 = vector.shape_cast %203 : vector<1x8x32xf32> to vector<8x32xf32>
    %c1_73 = arith.constant 1 : index
    %c0_74 = arith.constant 0 : index
    %c0_75 = arith.constant 0 : index
    %205 = vector.load %arg2[%c1_73, %c0_74, %c0_75] : memref<2x8x1xi32, #tpu.memory_space<vmem>>, vector<1x8x1xi32>
    %206 = vector.shape_cast %205 : vector<1x8x1xi32> to vector<8x1xi32>
    %c1_76 = arith.constant 1 : index
    %c0_77 = arith.constant 0 : index
    %c0_78 = arith.constant 0 : index
    %207 = vector.load %arg3[%c1_76, %c0_77, %c0_78] : memref<2x1x8xi32, #tpu.memory_space<vmem>>, vector<1x1x8xi32>
    %208 = vector.shape_cast %207 : vector<1x1x8xi32> to vector<1x8xi32>
    %209 = vector.broadcast %206 : vector<8x1xi32> to vector<8x8xi32>
    %210 = vector.broadcast %208 : vector<1x8xi32> to vector<8x8xi32>
    %211 = arith.cmpi eq, %209, %210 : vector<8x8xi32>
    %cst_79 = arith.constant dense<0.000000e+00> : vector<8x8xf32>
    %212 = tpu.matmul %204, %204, %cst_79 {dimension_numbers = #tpu.dot_dimension_numbers<[1], [1], [0], [0], [0, 0, 1, 0], [], []>, precision = #tpu.contract_precision<fp32>} : vector<8x32xf32>, vector<8x32xf32>, vector<8x8xf32> -> vector<8x8xf32>
    %cst_80 = arith.constant 0.000000e+00 : f32
    %213 = vector.broadcast %cst_80 : f32 to vector<8x8xf32>
    %214 = arith.select %2, %212, %213 : vector<8x8xi1>, vector<8x8xf32>
    %cst_81 = arith.constant dense<0.000000e+00> : vector<8xf32>
    %215 = vector.multi_reduction <add>, %214, %cst_81 [1] : vector<8x8xf32> to vector<8xf32>
    %216 = vector.shape_cast %215 : vector<8xf32> to vector<8x1xf32>
    %cst_82 = arith.constant dense<0.000000e+00> : vector<8xf32>
    %217 = vector.multi_reduction <add>, %214, %cst_82 [0] : vector<8x8xf32> to vector<8xf32>
    %218 = vector.shape_cast %217 : vector<8xf32> to vector<1x8xf32>
    %219 = vector.broadcast %216 : vector<8x1xf32> to vector<8x8xf32>
    %220 = vector.broadcast %218 : vector<1x8xf32> to vector<8x8xf32>
    %221 = arith.addf %219, %220 : vector<8x8xf32>
    %cst_83 = arith.constant 2.000000e+00 : f32
    %222 = vector.broadcast %cst_83 : f32 to vector<8x8xf32>
    %223 = arith.mulf %222, %212 : vector<8x8xf32>
    %224 = arith.subf %221, %223 : vector<8x8xf32>
    %cst_84 = arith.constant 0.000000e+00 : f32
    %225 = vector.broadcast %cst_84 : f32 to vector<8x8xf32>
    %226 = arith.maximumf %224, %225 : vector<8x8xf32>
    %227 = math.sqrt %226 : vector<8x8xf32>
    %cst_85 = arith.constant dense<0.000000e+00> : vector<8xf32>
    %228 = vector.multi_reduction <add>, %227, %cst_85 [1] : vector<8x8xf32> to vector<8xf32>
    %229 = vector.shape_cast %228 : vector<8xf32> to vector<8x1xf32>
    %cst_86 = arith.constant dense<0.000000e+00> : vector<1xf32>
    %230 = vector.multi_reduction <add>, %229, %cst_86 [0] : vector<8x1xf32> to vector<1xf32>
    %231 = vector.shape_cast %230 : vector<1xf32> to vector<1x1xf32>
    %cst_87 = arith.constant 1.562500e-02 : f32
    %232 = vector.broadcast %cst_87 : f32 to vector<1x1xf32>
    %233 = arith.mulf %231, %232 : vector<1x1xf32>
    %cst_88 = arith.constant -1.000000e+30 : f32
    %234 = vector.broadcast %cst_88 : f32 to vector<8x8xf32>
    %235 = arith.select %211, %227, %234 : vector<8x8xi1>, vector<8x8xf32>
    %cst_89 = arith.constant 1.000000e+30 : f32
    %236 = vector.broadcast %cst_89 : f32 to vector<8x8xf32>
    %237 = arith.select %211, %236, %227 : vector<8x8xi1>, vector<8x8xf32>
    %cst_90 = arith.constant dense<0xFF800000> : vector<8xf32>
    %238 = vector.multi_reduction <maximumf>, %235, %cst_90 [1] : vector<8x8xf32> to vector<8xf32>
    %239 = vector.shape_cast %238 : vector<8xf32> to vector<8x1xf32>
    %cst_91 = arith.constant dense<0x7F800000> : vector<8xf32>
    %240 = vector.multi_reduction <minimumf>, %237, %cst_91 [1] : vector<8x8xf32> to vector<8xf32>
    %241 = vector.shape_cast %240 : vector<8xf32> to vector<8x1xf32>
    %cst_92 = arith.constant 2.000000e-01 : f32
    %242 = vector.broadcast %cst_92 : f32 to vector<8x1xf32>
    %243 = arith.addf %242, %239 : vector<8x1xf32>
    %244 = arith.subf %243, %241 : vector<8x1xf32>
    %cst_93 = arith.constant 0.000000e+00 : f32
    %245 = vector.broadcast %cst_93 : f32 to vector<8x1xf32>
    %246 = arith.maximumf %244, %245 : vector<8x1xf32>
    %cst_94 = arith.constant dense<0.000000e+00> : vector<8xf32>
    %247 = vector.multi_reduction <add>, %246, %cst_94 [1] : vector<8x1xf32> to vector<8xf32>
    %248 = vector.shape_cast %247 : vector<8xf32> to vector<8x1xf32>
    %cst_95 = arith.constant dense<0.000000e+00> : vector<1xf32>
    %249 = vector.multi_reduction <add>, %248, %cst_95 [0] : vector<8x1xf32> to vector<1xf32>
    %250 = vector.shape_cast %249 : vector<1xf32> to vector<1x1xf32>
    %cst_96 = arith.constant 1.250000e-01 : f32
    %251 = vector.broadcast %cst_96 : f32 to vector<1x1xf32>
    %252 = arith.mulf %250, %251 : vector<1x1xf32>
    %253 = vector.extract_strided_slice %235 {offsets = [0, 0], sizes = [1, 8], strides = [1, 1]} : vector<8x8xf32> to vector<1x8xf32>
    %cst_97 = arith.constant 2.000000e-01 : f32
    %254 = vector.broadcast %cst_97 : f32 to vector<1x8xf32>
    %255 = arith.addf %254, %253 : vector<1x8xf32>
    %256 = vector.broadcast %255 : vector<1x8xf32> to vector<8x8xf32>
    %257 = arith.subf %256, %237 : vector<8x8xf32>
    %cst_98 = arith.constant 0.000000e+00 : f32
    %258 = vector.broadcast %cst_98 : f32 to vector<8x8xf32>
    %259 = arith.maximumf %257, %258 : vector<8x8xf32>
    %cst_99 = arith.constant dense<0.000000e+00> : vector<8xf32>
    %260 = vector.multi_reduction <add>, %259, %cst_99 [0] : vector<8x8xf32> to vector<8xf32>
    %261 = vector.shape_cast %260 : vector<8xf32> to vector<1x8xf32>
    %262 = arith.addf %3, %261 : vector<1x8xf32>
    %cst_100 = arith.constant 0.000000e+00 : f32
    %263 = vector.broadcast %cst_100 : f32 to vector<8x8xf32>
    %264 = arith.cmpf ogt, %259, %263 : vector<8x8xf32>
    %265 = arith.extui %264 : vector<8x8xi1> to vector<8x8xi32>
    %266 = arith.sitofp %265 : vector<8x8xi32> to vector<8x8xf32>
    %cst_101 = arith.constant dense<0.000000e+00> : vector<8xf32>
    %267 = vector.multi_reduction <add>, %266, %cst_101 [0] : vector<8x8xf32> to vector<8xf32>
    %268 = vector.shape_cast %267 : vector<8xf32> to vector<1x8xf32>
    %269 = arith.addf %3, %268 : vector<1x8xf32>
    %270 = vector.extract_strided_slice %235 {offsets = [1, 0], sizes = [1, 8], strides = [1, 1]} : vector<8x8xf32> to vector<1x8xf32>
    %cst_102 = arith.constant 2.000000e-01 : f32
    %271 = vector.broadcast %cst_102 : f32 to vector<1x8xf32>
    %272 = arith.addf %271, %270 : vector<1x8xf32>
    %273 = vector.broadcast %272 : vector<1x8xf32> to vector<8x8xf32>
    %274 = arith.subf %273, %237 : vector<8x8xf32>
    %cst_103 = arith.constant 0.000000e+00 : f32
    %275 = vector.broadcast %cst_103 : f32 to vector<8x8xf32>
    %276 = arith.maximumf %274, %275 : vector<8x8xf32>
    %cst_104 = arith.constant dense<0.000000e+00> : vector<8xf32>
    %277 = vector.multi_reduction <add>, %276, %cst_104 [0] : vector<8x8xf32> to vector<8xf32>
    %278 = vector.shape_cast %277 : vector<8xf32> to vector<1x8xf32>
    %279 = arith.addf %262, %278 : vector<1x8xf32>
    %cst_105 = arith.constant 0.000000e+00 : f32
    %280 = vector.broadcast %cst_105 : f32 to vector<8x8xf32>
    %281 = arith.cmpf ogt, %276, %280 : vector<8x8xf32>
    %282 = arith.extui %281 : vector<8x8xi1> to vector<8x8xi32>
    %283 = arith.sitofp %282 : vector<8x8xi32> to vector<8x8xf32>
    %cst_106 = arith.constant dense<0.000000e+00> : vector<8xf32>
    %284 = vector.multi_reduction <add>, %283, %cst_106 [0] : vector<8x8xf32> to vector<8xf32>
    %285 = vector.shape_cast %284 : vector<8xf32> to vector<1x8xf32>
    %286 = arith.addf %269, %285 : vector<1x8xf32>
    %287 = vector.extract_strided_slice %235 {offsets = [2, 0], sizes = [1, 8], strides = [1, 1]} : vector<8x8xf32> to vector<1x8xf32>
    %cst_107 = arith.constant 2.000000e-01 : f32
    %288 = vector.broadcast %cst_107 : f32 to vector<1x8xf32>
    %289 = arith.addf %288, %287 : vector<1x8xf32>
    %290 = vector.broadcast %289 : vector<1x8xf32> to vector<8x8xf32>
    %291 = arith.subf %290, %237 : vector<8x8xf32>
    %cst_108 = arith.constant 0.000000e+00 : f32
    %292 = vector.broadcast %cst_108 : f32 to vector<8x8xf32>
    %293 = arith.maximumf %291, %292 : vector<8x8xf32>
    %cst_109 = arith.constant dense<0.000000e+00> : vector<8xf32>
    %294 = vector.multi_reduction <add>, %293, %cst_109 [0] : vector<8x8xf32> to vector<8xf32>
    %295 = vector.shape_cast %294 : vector<8xf32> to vector<1x8xf32>
    %296 = arith.addf %279, %295 : vector<1x8xf32>
    %cst_110 = arith.constant 0.000000e+00 : f32
    %297 = vector.broadcast %cst_110 : f32 to vector<8x8xf32>
    %298 = arith.cmpf ogt, %293, %297 : vector<8x8xf32>
    %299 = arith.extui %298 : vector<8x8xi1> to vector<8x8xi32>
    %300 = arith.sitofp %299 : vector<8x8xi32> to vector<8x8xf32>
    %cst_111 = arith.constant dense<0.000000e+00> : vector<8xf32>
    %301 = vector.multi_reduction <add>, %300, %cst_111 [0] : vector<8x8xf32> to vector<8xf32>
    %302 = vector.shape_cast %301 : vector<8xf32> to vector<1x8xf32>
    %303 = arith.addf %286, %302 : vector<1x8xf32>
    %304 = vector.extract_strided_slice %235 {offsets = [3, 0], sizes = [1, 8], strides = [1, 1]} : vector<8x8xf32> to vector<1x8xf32>
    %cst_112 = arith.constant 2.000000e-01 : f32
    %305 = vector.broadcast %cst_112 : f32 to vector<1x8xf32>
    %306 = arith.addf %305, %304 : vector<1x8xf32>
    %307 = vector.broadcast %306 : vector<1x8xf32> to vector<8x8xf32>
    %308 = arith.subf %307, %237 : vector<8x8xf32>
    %cst_113 = arith.constant 0.000000e+00 : f32
    %309 = vector.broadcast %cst_113 : f32 to vector<8x8xf32>
    %310 = arith.maximumf %308, %309 : vector<8x8xf32>
    %cst_114 = arith.constant dense<0.000000e+00> : vector<8xf32>
    %311 = vector.multi_reduction <add>, %310, %cst_114 [0] : vector<8x8xf32> to vector<8xf32>
    %312 = vector.shape_cast %311 : vector<8xf32> to vector<1x8xf32>
    %313 = arith.addf %296, %312 : vector<1x8xf32>
    %cst_115 = arith.constant 0.000000e+00 : f32
    %314 = vector.broadcast %cst_115 : f32 to vector<8x8xf32>
    %315 = arith.cmpf ogt, %310, %314 : vector<8x8xf32>
    %316 = arith.extui %315 : vector<8x8xi1> to vector<8x8xi32>
    %317 = arith.sitofp %316 : vector<8x8xi32> to vector<8x8xf32>
    %cst_116 = arith.constant dense<0.000000e+00> : vector<8xf32>
    %318 = vector.multi_reduction <add>, %317, %cst_116 [0] : vector<8x8xf32> to vector<8xf32>
    %319 = vector.shape_cast %318 : vector<8xf32> to vector<1x8xf32>
    %320 = arith.addf %303, %319 : vector<1x8xf32>
    %321 = vector.extract_strided_slice %235 {offsets = [4, 0], sizes = [1, 8], strides = [1, 1]} : vector<8x8xf32> to vector<1x8xf32>
    %cst_117 = arith.constant 2.000000e-01 : f32
    %322 = vector.broadcast %cst_117 : f32 to vector<1x8xf32>
    %323 = arith.addf %322, %321 : vector<1x8xf32>
    %324 = vector.broadcast %323 : vector<1x8xf32> to vector<8x8xf32>
    %325 = arith.subf %324, %237 : vector<8x8xf32>
    %cst_118 = arith.constant 0.000000e+00 : f32
    %326 = vector.broadcast %cst_118 : f32 to vector<8x8xf32>
    %327 = arith.maximumf %325, %326 : vector<8x8xf32>
    %cst_119 = arith.constant dense<0.000000e+00> : vector<8xf32>
    %328 = vector.multi_reduction <add>, %327, %cst_119 [0] : vector<8x8xf32> to vector<8xf32>
    %329 = vector.shape_cast %328 : vector<8xf32> to vector<1x8xf32>
    %330 = arith.addf %313, %329 : vector<1x8xf32>
    %cst_120 = arith.constant 0.000000e+00 : f32
    %331 = vector.broadcast %cst_120 : f32 to vector<8x8xf32>
    %332 = arith.cmpf ogt, %327, %331 : vector<8x8xf32>
    %333 = arith.extui %332 : vector<8x8xi1> to vector<8x8xi32>
    %334 = arith.sitofp %333 : vector<8x8xi32> to vector<8x8xf32>
    %cst_121 = arith.constant dense<0.000000e+00> : vector<8xf32>
    %335 = vector.multi_reduction <add>, %334, %cst_121 [0] : vector<8x8xf32> to vector<8xf32>
    %336 = vector.shape_cast %335 : vector<8xf32> to vector<1x8xf32>
    %337 = arith.addf %320, %336 : vector<1x8xf32>
    %338 = vector.extract_strided_slice %235 {offsets = [5, 0], sizes = [1, 8], strides = [1, 1]} : vector<8x8xf32> to vector<1x8xf32>
    %cst_122 = arith.constant 2.000000e-01 : f32
    %339 = vector.broadcast %cst_122 : f32 to vector<1x8xf32>
    %340 = arith.addf %339, %338 : vector<1x8xf32>
    %341 = vector.broadcast %340 : vector<1x8xf32> to vector<8x8xf32>
    %342 = arith.subf %341, %237 : vector<8x8xf32>
    %cst_123 = arith.constant 0.000000e+00 : f32
    %343 = vector.broadcast %cst_123 : f32 to vector<8x8xf32>
    %344 = arith.maximumf %342, %343 : vector<8x8xf32>
    %cst_124 = arith.constant dense<0.000000e+00> : vector<8xf32>
    %345 = vector.multi_reduction <add>, %344, %cst_124 [0] : vector<8x8xf32> to vector<8xf32>
    %346 = vector.shape_cast %345 : vector<8xf32> to vector<1x8xf32>
    %347 = arith.addf %330, %346 : vector<1x8xf32>
    %cst_125 = arith.constant 0.000000e+00 : f32
    %348 = vector.broadcast %cst_125 : f32 to vector<8x8xf32>
    %349 = arith.cmpf ogt, %344, %348 : vector<8x8xf32>
    %350 = arith.extui %349 : vector<8x8xi1> to vector<8x8xi32>
    %351 = arith.sitofp %350 : vector<8x8xi32> to vector<8x8xf32>
    %cst_126 = arith.constant dense<0.000000e+00> : vector<8xf32>
    %352 = vector.multi_reduction <add>, %351, %cst_126 [0] : vector<8x8xf32> to vector<8xf32>
    %353 = vector.shape_cast %352 : vector<8xf32> to vector<1x8xf32>
    %354 = arith.addf %337, %353 : vector<1x8xf32>
    %355 = vector.extract_strided_slice %235 {offsets = [6, 0], sizes = [1, 8], strides = [1, 1]} : vector<8x8xf32> to vector<1x8xf32>
    %cst_127 = arith.constant 2.000000e-01 : f32
    %356 = vector.broadcast %cst_127 : f32 to vector<1x8xf32>
    %357 = arith.addf %356, %355 : vector<1x8xf32>
    %358 = vector.broadcast %357 : vector<1x8xf32> to vector<8x8xf32>
    %359 = arith.subf %358, %237 : vector<8x8xf32>
    %cst_128 = arith.constant 0.000000e+00 : f32
    %360 = vector.broadcast %cst_128 : f32 to vector<8x8xf32>
    %361 = arith.maximumf %359, %360 : vector<8x8xf32>
    %cst_129 = arith.constant dense<0.000000e+00> : vector<8xf32>
    %362 = vector.multi_reduction <add>, %361, %cst_129 [0] : vector<8x8xf32> to vector<8xf32>
    %363 = vector.shape_cast %362 : vector<8xf32> to vector<1x8xf32>
    %364 = arith.addf %347, %363 : vector<1x8xf32>
    %cst_130 = arith.constant 0.000000e+00 : f32
    %365 = vector.broadcast %cst_130 : f32 to vector<8x8xf32>
    %366 = arith.cmpf ogt, %361, %365 : vector<8x8xf32>
    %367 = arith.extui %366 : vector<8x8xi1> to vector<8x8xi32>
    %368 = arith.sitofp %367 : vector<8x8xi32> to vector<8x8xf32>
    %cst_131 = arith.constant dense<0.000000e+00> : vector<8xf32>
    %369 = vector.multi_reduction <add>, %368, %cst_131 [0] : vector<8x8xf32> to vector<8xf32>
    %370 = vector.shape_cast %369 : vector<8xf32> to vector<1x8xf32>
    %371 = arith.addf %354, %370 : vector<1x8xf32>
    %372 = vector.extract_strided_slice %235 {offsets = [7, 0], sizes = [1, 8], strides = [1, 1]} : vector<8x8xf32> to vector<1x8xf32>
    %cst_132 = arith.constant 2.000000e-01 : f32
    %373 = vector.broadcast %cst_132 : f32 to vector<1x8xf32>
    %374 = arith.addf %373, %372 : vector<1x8xf32>
    %375 = vector.broadcast %374 : vector<1x8xf32> to vector<8x8xf32>
    %376 = arith.subf %375, %237 : vector<8x8xf32>
    %cst_133 = arith.constant 0.000000e+00 : f32
    %377 = vector.broadcast %cst_133 : f32 to vector<8x8xf32>
    %378 = arith.maximumf %376, %377 : vector<8x8xf32>
    %cst_134 = arith.constant dense<0.000000e+00> : vector<8xf32>
    %379 = vector.multi_reduction <add>, %378, %cst_134 [0] : vector<8x8xf32> to vector<8xf32>
    %380 = vector.shape_cast %379 : vector<8xf32> to vector<1x8xf32>
    %381 = arith.addf %364, %380 : vector<1x8xf32>
    %cst_135 = arith.constant 0.000000e+00 : f32
    %382 = vector.broadcast %cst_135 : f32 to vector<8x8xf32>
    %383 = arith.cmpf ogt, %378, %382 : vector<8x8xf32>
    %384 = arith.extui %383 : vector<8x8xi1> to vector<8x8xi32>
    %385 = arith.sitofp %384 : vector<8x8xi32> to vector<8x8xf32>
    %cst_136 = arith.constant dense<0.000000e+00> : vector<8xf32>
    %386 = vector.multi_reduction <add>, %385, %cst_136 [0] : vector<8x8xf32> to vector<8xf32>
    %387 = vector.shape_cast %386 : vector<8xf32> to vector<1x8xf32>
    %388 = arith.addf %371, %387 : vector<1x8xf32>
    %cst_137 = arith.constant dense<0.000000e+00> : vector<1xf32>
    %389 = vector.multi_reduction <add>, %381, %cst_137 [1] : vector<1x8xf32> to vector<1xf32>
    %390 = vector.shape_cast %389 : vector<1xf32> to vector<1x1xf32>
    %cst_138 = arith.constant dense<0.000000e+00> : vector<1xf32>
    %391 = vector.multi_reduction <add>, %388, %cst_138 [1] : vector<1x8xf32> to vector<1xf32>
    %392 = vector.shape_cast %391 : vector<1xf32> to vector<1x1xf32>
    %cst_139 = arith.constant 0.000000e+00 : f32
    %393 = vector.broadcast %cst_139 : f32 to vector<1x1xf32>
    %394 = arith.cmpf ogt, %392, %393 : vector<1x1xf32>
    %cst_140 = arith.constant 1.000000e+00 : f32
    %395 = vector.broadcast %cst_140 : f32 to vector<1x1xf32>
    %396 = arith.maximumf %392, %395 : vector<1x1xf32>
    %397 = arith.divf %390, %396 : vector<1x1xf32>
    %cst_141 = arith.constant 0.000000e+00 : f32
    %398 = vector.broadcast %cst_141 : f32 to vector<1x1xf32>
    %399 = arith.select %394, %397, %398 : vector<1x1xi1>, vector<1x1xf32>
    %400 = tpu.concatenate %399, %252, %233, %392 in 1 : vector<1x1xf32>, vector<1x1xf32>, vector<1x1xf32>, vector<1x1xf32> -> vector<1x4xf32>
    %401 = vector.shape_cast %400 : vector<1x4xf32> to vector<1x1x4xf32>
    %402 = tpu.concatenate %202, %401 in 0 : vector<1x1x4xf32>, vector<1x1x4xf32> -> vector<2x1x4xf32>
    %c0_142 = arith.constant 0 : index
    %c0_143 = arith.constant 0 : index
    %c0_144 = arith.constant 0 : index
    %403 = vector.load %arg4[%c0_142, %c0_143, %c0_144] : memref<2x1x4xf32, #tpu.memory_space<vmem>>, vector<2x1x4xf32>
    tpu.vector_store %arg4[%c0_142, %c0_143, %c0_144], %402 {strides = array<i32>} : memref<2x1x4xf32, #tpu.memory_space<vmem>>, vector<2x1x4xf32>,
    return
  }
  func.func @transform_0(%arg0: i32) -> (i32, i32, i32) {
    %c0_i32 = arith.constant 0 : i32
    %c0_i32_0 = arith.constant 0 : i32
    %c0_i32_1 = arith.constant 0 : i32
    return %arg0, %c0_i32, %c0_i32_0 : i32, i32, i32
  }
  func.func @transform_1(%arg0: i32) -> (i32, i32, i32) {
    %c0_i32 = arith.constant 0 : i32
    %c0_i32_0 = arith.constant 0 : i32
    %c0_i32_1 = arith.constant 0 : i32
    return %arg0, %c0_i32, %c0_i32_0 : i32, i32, i32
  }
  func.func @transform_2(%arg0: i32) -> (i32, i32, i32) {
    %c0_i32 = arith.constant 0 : i32
    %c0_i32_0 = arith.constant 0 : i32
    %c0_i32_1 = arith.constant 0 : i32
    return %arg0, %c0_i32, %c0_i32_0 : i32, i32, i32
  }
  func.func @transform_3(%arg0: i32) -> (i32, i32, i32) {
    %c0_i32 = arith.constant 0 : i32
    %c0_i32_0 = arith.constant 0 : i32
    %c0_i32_1 = arith.constant 0 : i32
    return %arg0, %c0_i32, %c0_i32_0 : i32, i32, i32
  }
}

</mosaic_0001>

<bundles_post_ra>
// kernel: tpu_custom_call.1
= control target key start
LH: loop header
LB: loop body
LE: loop exit
PB: predicated region body
PF: predicated region fallthrough
CT: control target
= control target key end

     0   :  { %8 = vsyncpa [#allocation3], 0  ;;  %s2438_s0 = inlined_call_operand.vmem [shape: f32[4,8,32], index: 0, kind: input, shape index: {}]   ;;  %s2439_s1 = inlined_call_operand.vmem [shape: s32[4,8,1], index: 1, kind: input, shape index: {}]   ;;  %s2440_s2 = inlined_call_operand.vmem [shape: s32[4,1,8], index: 2, kind: input, shape index: {}]   ;;  %s2441_s3 = inlined_call_operand.hbm [shape: f32[4,1,4], index: 3, kind: output, shape index: {}]  }
   0x1   :  { %10 = vsyncpa [#allocation3 + $0x1], 0  ;;  %s2039_s12 = smov 0   ;;  %s2041_s13 = smov 0  }
   0x2   :  { %s2043_s14 = smov 0   ;;  %s2045_s15 = smov 0  }
   0x3 LB: > { %s2060_s16 = sadd.s32 4294967295, %s2011_s15   ;;  %s1776_s17 = sadd.s32 4294967294, %s2011_s15   ;;  %s2011_s15 = sphi %s2045_s15, %s2447_s15   ;;  %s2007_s14 = sphi %s2043_s14, %s2446_s14   ;;  %s2003_s13 = sphi %s2041_s13, %s2445_s13   ;;  %s1999_s12 = sphi %s2039_s12, %s2444_s12  }
   0x4   : > { %s2064_s18 = sadd.s32 1, %s2011_s15   ;;  %s101_s19 = sadd.s32 1, %s2007_s14 }
   0x5   : > { %s98_s20 = ssub.s32 %s2011_s15, %s2064_s18  ;;  %p111_p0 = scmp.ne.s32.totalorder %s2007_s14, %s2003_s13 }
   0x6   : > { %p99_p1 = scmp.eq.s32.totalorder %s98_s20, 0  ;;  %p112_p2 = scmp.eq.s32.totalorder %s2060_s16, 1 }
   0x7   : > { %p117_p3 = scmp.ne.s32.totalorder %s2003_s13, %s1999_s12  ;;  %p118_p4 = scmp.eq.s32.totalorder %s1776_s17, 1 }
   0x8   : > { %s2075_s21 = scalar_select %p99_p1, %s2007_s14, %s101_s19  }
   0x9   : > { %p2077_p5 = por %p112_p2, %p111_p0  ;;  %p2081_p6 = por %p118_p4, %p117_p3 }
   0xa   : > { %p1779_p7 = scmp.ge.s32.totalorder %s2011_s15, 1  ;;  %p162_p8 = scmp.lt.s32.totalorder %s2011_s15, 3 }
   0xc   : > { %p163_p9 = pnand %p1779_p7, %p162_p8 }
   0xd   : > { %s1781_s24 = sshll.u32 (!%p163_p9), %s2060_s16, 1  ;;  %s192_s8 = sand.u32 (!%p163_p9), 1, %s2003_s13  }
   0xe   : > { %166 = sbr.rel (%p163_p9) target bundleno = 661 (0x295), region = 32  ;;  %p196_p10 = scmp.lt.s32.totalorder (!%p163_p9), %s1781_s24, 3 }
   0xf   : > { %s1780_s9 = sshll.u32 (!%p163_p9), %s192_s8, 1  ;;  %s1812_s11 = sshll.u32 (!%p163_p9), %s2060_s16, 5 }
  0x10   : > { %s194_s10 = scalar_lea.vmem (!%p163_p9), [#allocation2], %s1780_s9  ;;  %s2398_s16 = scalar_lea.sflag (!%p163_p9), [#allocation3], %s192_s8 }
  0x11   : > { %s1693_s17 = sshll.u32 (!%p163_p9), %s194_s10, 4  ;;  %s2016_s26 = smov (!%p163_p9), [#allocation2]   ;;  %s2391_s17 = int_to_ptr.vmem [resolvable:$true] %s1693_s17 }
  0x12   : > { %s1955_s27 = sshll.u32 (!%p163_p9), %s2016_s26, 4  ;;  %s1956_s27 = int_to_ptr.vmem [resolvable:$false] %s1955_s27 }
  0x13   : > { %v2013_v0 = vmov 0.0   ;;  %vm2014_vm0 = vmmov 0   ;;  %s2449_s24 = smov (!%p196_p10, %s1781_s24), 3  ;;  %vm229_vm1 = vcmask 261120   ;;  %v2015_v15 = vmov 0   ;;  %p1958_p0 = scmp.lt.s32.totalorder %s2391_s17, %s1956_s27 }
  0x14   : > { %1837 = vmatprep.subr.mxu0 %v2013_v0  ;;  %1839 = vmatprep.mubr.msk.f32.mxu0 %vm2014_vm0, %v2013_v0  ;;  %s1782_s25 = sshll.u32 %s2449_s24, 3  ;;  %v213_v21 = vlaneseq  ;;  %vm680_vm3 = vcmask 64512   ;;  %s210_s7 = scalar_lea.vmem %s2440_s2, %s2449_s24 }
  0x15   : > { %1842 = vmatprep.subr.mxu1 %v2013_v0  ;;  %1844 = vmatprep.mubr.msk.f32.mxu1 %vm2014_vm0, %v2013_v0  ;;  %s199_s28 = scalar_lea.vmem %s2438_s0, %s1782_s25  ;;  %s205_s4 = scalar_lea.vmem %s2439_s1, %s1782_s25 }
  0x16   : > { %v218_v1 = vld [vmem:[%s199_s28] sm:$0xff]  ;;  %v1795_v2 = vld [vmem:[%s199_s28 + $0x8] sm:$0xff]  ;;  %1941 = vset.pattern.permute.xlu1 %v2015_v15  ;;  %1942 = vset.pattern.permute.xlu0 %v2015_v15  ;;  %v2137_v28 = vshrl.u32 %v213_v21, 7  ;;  %v216_v29 = vand.u32 127, %v213_v21  ;;  %s2389_s24 = scalar_lea.hbm %s2441_s3, %s1812_s11  ;;  %s1951_s25 = scalar_lea.vmem %s2391_s17, 32 }
  0x17   : > { %v231_v3 = vsel %vm229_vm1, %v218_v1, 0  ;;  %v963_v4 = vsel %vm229_vm1, %v1795_v2, 0  ;;  %v219_v16 = vld [vmem:[%s205_s4] sm:$0xff]  ;;  %v1796_v17 = vld [vmem:[%s205_s4 + $0x8] sm:$0xff]  ;;  %p1952_p11 = scmp.ne.s32.totalorder %s2391_s17, %s1951_s25  ;;  %s1957_s28 = scalar_lea.vmem %s1956_s27, 64 }
  0x18   : > { %v264_v5 = vand.u32 4294901760, %v231_v3  ;;  %v996_v7 = vand.u32 4294901760, %v963_v4  ;;  %222 = vperm.xlu1 %1941, %v219_v16   ;;  %vm217_vm2 = vcmp.eq.s32.totalorder %v2137_v28, %v216_v29  ;;  %v1798_v29 = vld [vmem:[%s210_s7 + $0x1] ss:$0 sm:$0xff]  ;;  %p1959_p1 = scmp.lt.s32.totalorder %s1957_s28, %s1951_s25 }
  0x19   : > { %p1953_p12 = pnand %p1952_p11, %p2077_p5 }
  0x1a   : > { %1838 = vmatpush3.xpose.msra.mxu0 %v264_v5  ;;  %v300_v6 = vsub.f32 %v231_v3, %v264_v5  ;;  %v1032_v10 = vsub.f32 %v963_v4, %v996_v7  ;;  %p1960_p2 = por %p1959_p1, %p1958_p0 }
  0x1b   : > { %1847 = vmatprep.subr.mxu0 %v2013_v0  ;;  %p1954_p13 = pneg %p1953_p12 }
  0x1c   : > { %v301_v8 = vand.u32 4294901760, %v300_v6  ;;  %v1033_v12 = vand.u32 4294901760, %v1032_v10  ;;  %955 = vperm.xlu1 %1941, %v1796_v17  }
  0x1d   : > { %p1961_p3 = pnand %p1960_p2, %p1954_p13 }
  0x1e   : > { %v302_v9 = vsub.f32 %v300_v6, %v301_v8  ;;  %v1034_v13 = vsub.f32 %v1032_v10, %v1033_v12 }
  0x20   : > { %v303_v11 = vand.u32 4294901760, %v302_v9  ;;  %v1035_v14 = vand.u32 4294901760, %v1034_v13 }
  0x22   : > { %1840 = vmatmul.mubr.f32.vlgmr.msra.gmra.mxu0 %v303_v11  ;;  %1843 = vmatpush3.xpose.msra.mxu1 %v303_v11 }
  0x23   : > { %1848 = vmatpush3.xpose.msra.mxu0 %v300_v6  ;;  %1849 = vmatprep.mubr.msk.f32.mxu0 %vm2014_vm0, %v2013_v0 }
  0x24   : > { %1852 = vmatprep.subr.mxu1 %v2013_v0  ;;  %1857 = vmatprep.subr.mxu0 %v2013_v0 }
  0x25   : > { %1845 = vmatmul.mubr.f32.vlgmr.msra.gmra.mxu1 %v264_v5 }
  0x26   : > { %1850 = vmatmul.mubr.f32.vlgmr.msra.gmra.mxu0 %v300_v6  ;;  %1853 = vmatpush3.xpose.msra.mxu1 %v264_v5 }
  0x27   : > { %1858 = vmatpush3.xpose.msra.mxu0 %v301_v8  ;;  %1854 = vmatprep.mubr.msk.f32.mxu1 %vm2014_vm0, %v2013_v0 }
  0x28   : > { %1859 = vmatprep.mubr.msk.f32.mxu0 %vm2014_vm0, %v2013_v0  ;;  %1862 = vmatprep.subr.mxu1 %v2013_v0 }
  0x29   : > { %1855 = vmatmul.mubr.f32.vlgmr.msra.gmra.mxu1 %v301_v8  ;;  %1867 = vmatprep.subr.mxu0 %v2013_v0 }
  0x2a   : > { %1860 = vmatmul.mubr.f32.vlgmr.msra.gmra.mxu0 %v264_v5  ;;  %1863 = vmatpush3.xpose.msra.mxu1 %v264_v5 }
  0x2b   : > { %1868 = vmatpush3.xpose.msra.mxu0 %v996_v7  ;;  %1864 = vmatprep.mubr.msk.f32.mxu1 %vm2014_vm0, %v2013_v0 }
  0x2c   : > { %1869 = vmatprep.mubr.msk.f32.mxu0 %vm2014_vm0, %v2013_v0  ;;  %1872 = vmatprep.subr.mxu1 %v2013_v0 }
  0x2d   : > { %1865 = vmatmul.mubr.f32.vlgmr.msra.gmra.mxu1 %v264_v5  ;;  %1877 = vmatprep.subr.mxu0 %v2013_v0 }
  0x2e   : > { %1870 = vmatmul.mubr.f32.vlgmr.msra.gmra.mxu0 %v1035_v14  ;;  %1873 = vmatpush3.xpose.msra.mxu1 %v1035_v14 }
  0x2f   : > { %1878 = vmatpush3.xpose.msra.mxu0 %v1032_v10  ;;  %1874 = vmatprep.mubr.msk.f32.mxu1 %vm2014_vm0, %v2013_v0 }
  0x30   : > { %1879 = vmatprep.mubr.msk.f32.mxu0 %vm2014_vm0, %v2013_v0  ;;  %1882 = vmatprep.subr.mxu1 %v2013_v0 }
  0x31   : > { %1875 = vmatmul.mubr.f32.vlgmr.msra.gmra.mxu1 %v996_v7  ;;  %1887 = vmatprep.subr.mxu0 %v2013_v0 }
  0x32   : > { %1880 = vmatmul.mubr.f32.vlgmr.msra.gmra.mxu0 %v1032_v10  ;;  %1883 = vmatpush3.xpose.msra.mxu1 %v996_v7 }
  0x33   : > { %1888 = vmatpush3.xpose.msra.mxu0 %v1033_v12  ;;  %1884 = vmatprep.mubr.msk.f32.mxu1 %vm2014_vm0, %v2013_v0 }
  0x34   : > { %1889 = vmatprep.mubr.msk.f32.mxu0 %vm2014_vm0, %v2013_v0  ;;  %1892 = vmatprep.subr.mxu1 %v2013_v0 }
  0x35   : > { %1885 = vmatmul.mubr.f32.vlgmr.msra.gmra.mxu1 %v1033_v12 }
  0x36   : > { %1890 = vmatmul.mubr.f32.vlgmr.msra.gmra.mxu0 %v996_v7  ;;  %1893 = vmatpush3.xpose.msra.mxu1 %v996_v7 }
  0x37   : > { %1894 = vmatprep.mubr.msk.f32.mxu1 %vm2014_vm0, %v2013_v0 }
  0x39   : > { %1895 = vmatmul.mubr.f32.vlgmr.msra.gmra.mxu1 %v996_v7 }
  0xe2   : > { %v305_v18 = vpop.f32.mrf.mxu0 }
  0xe4   : > { %v1841_v19 = vpop.f32.mrf.mxu0 }
  0xe5   : > { %v381_v20 = vpop.f32.mrf.mxu1  ;;  %v223_v19 = vpop.permute.xlu1 %222 }
  0xe6   : > { %v382_v22 = vadd.f32 %v381_v20, %v305_v18  ;;  %v455_v23 = vpop.f32.mrf.mxu0  ;;  %v1786_v18 = vld [vmem:[%s210_s7] ss:$0 sm:$0xff] }
  0xe7   : > { %v1846_v24 = vpop.f32.mrf.mxu1  ;;  %vm228_vm4 = vcmp.eq.s32.totalorder %v223_v19, %v1786_v18 }
  0xe8   : > { %v456_v25 = vadd.f32 %v455_v23, %v382_v22  ;;  %v1851_v26 = vpop.f32.mrf.mxu0  ;;  %v733_v23 = vsub.s32 0, %v2137_v28 }
  0xe9   : > { %v529_v27 = vpop.f32.mrf.mxu1  ;;  %v783_v26 = vsub.s32 2, %v2137_v28 }
  0xea   : > { %v530_v30 = vadd.f32 %v529_v27, %v456_v25  ;;  %v603_v31 = vpop.f32.mrf.mxu0  ;;  %v758_v25 = vsub.s32 1, %v2137_v28 }
  0xeb   : > { %v1856_v32 = vpop.f32.mrf.mxu1 }
  0xec   : > { %v604_v33 = vadd.f32 %v603_v31, %v530_v30  ;;  %v1861_v34 = vpop.f32.mrf.mxu0  ;;  %v808_v30 = vsub.s32 3, %v2137_v28  ;;  %v833_v31 = vsub.s32 4, %v2137_v28  ;;  %v858_v32 = vsub.s32 5, %v2137_v28 }
  0xed   : > { %v675_v35 = vpop.f32.mrf.mxu1 }
  0xee   : > { %v676_v36 = vadd.f32 %v675_v35, %v604_v33  ;;  %v1037_v37 = vpop.f32.mrf.mxu0  ;;  %v956_v35 = vpop.permute.xlu1 %955 }
  0xef   : > { %v1866_v38 = vpop.f32.mrf.mxu1  ;;  %vm961_vm9 = vcmp.eq.s32.totalorder %v956_v35, %v1798_v29 }
  0xf0   : > { %v679_v39 = vsel %vm217_vm2, %v676_v36, 0.0  ;;  %v1871_v40 = vpop.f32.mrf.mxu0  ;;  %v691_v6 = vmul.f32 2.0, %v676_v36  ;;  %v883_v36 = vsub.s32 6, %v2137_v28 }
  0xf1   : > { %v1113_v41 = vpop.f32.mrf.mxu1  ;;  %v681_v42 = vsel %vm680_vm3, %v679_v39, 0.0 }
  0xf2   : > { %v1114_v43 = vadd.f32 %v1113_v41, %v1037_v37  ;;  %682 = vadd.xlane.f32.xlu0 %v681_v42  ;;  %v1187_v44 = vpop.f32.mrf.mxu0  ;;  %v684_v59 = vrot.slane %v681_v42, 4  ;;  %v908_v37 = vsub.s32 7, %v2137_v28 }
  0xf3   : > { %v1876_v45 = vpop.f32.mrf.mxu1 }
  0xf4   : > { %v1188_v46 = vadd.f32 %v1187_v44, %v1114_v43  ;;  %v1881_v47 = vpop.f32.mrf.mxu0  ;;  %v685_v60 = vadd.f32 %v684_v59, %v681_v42 }
  0xf5   : > { %v1261_v48 = vpop.f32.mrf.mxu1 }
  0xf6   : > { %v1262_v49 = vadd.f32 %v1261_v48, %v1188_v46  ;;  %v1335_v50 = vpop.f32.mrf.mxu0  ;;  %v686_v61 = vrot.slane %v685_v60, 2 }
  0xf7   : > { %v1886_v51 = vpop.f32.mrf.mxu1 }
  0xf8   : > { %v1336_v52 = vadd.f32 %v1335_v50, %v1262_v49  ;;  %v1891_v53 = vpop.f32.mrf.mxu0  ;;  %v687_v63 = vadd.f32 %v686_v61, %v685_v60 }
  0xf9   : > { %v1407_v54 = vpop.f32.mrf.mxu1 }
  0xfa   : > { %v1408_v55 = vadd.f32 %v1407_v54, %v1336_v52  ;;  %v688_v2 = vrot.slane %v687_v63, 1 }
  0xfb   : > { %v1896_v56 = vpop.f32.mrf.mxu1 }
  0xfc   : > { %v1411_v57 = vsel %vm217_vm2, %v1408_v55, 0.0  ;;  %v689_v4 = vadd.f32 %v688_v2, %v687_v63  ;;  %v1422_v14 = vmul.f32 2.0, %v1408_v55 }
  0xfd   : > { %v1412_v58 = vsel %vm680_vm3, %v1411_v57, 0.0 }
  0xfe   : > { %1413 = vadd.xlane.f32.xlu0 %v1412_v58  ;;  %v1415_v62 = vrot.slane %v1412_v58, 4 }
 0x100   : > { %v1416_v1 = vadd.f32 %v1415_v62, %v1412_v58 }
 0x102   : > { %v1417_v3 = vrot.slane %v1416_v1, 2 }
 0x104   : > { %v1418_v9 = vadd.f32 %v1417_v3, %v1416_v1 }
 0x106   : > { %v1419_v11 = vrot.slane %v1418_v9, 1 }
 0x108   : > { %v1420_v12 = vadd.f32 %v1419_v11, %v1418_v9 }
 0x17b   : > { %v683_v5 = vpop.xlane.xlu0 %682 }
 0x17c   : > { %v690_v7 = vadd.f32 %v689_v4, %v683_v5 }
 0x17e   : > { %v692_v8 = vsub.f32 %v690_v7, %v691_v6 }
 0x180   : > { %v693_v10 = vmax.f32 %v692_v8, 0.0 }
 0x182   : > { %1943 = vrsqrt.f32 %v693_v10  ;;  %vm696_vm5 = vcmp.eq.f32.partialorder %v693_v10, inf  ;;  %v699_v22 = vand.u32 2147483648, %v693_v10  ;;  %vm698_vm6 = vcmp.eq.f32.partialorder %v693_v10, 0.0 }
 0x187   : > { %v1414_v13 = vpop.xlane.xlu0 %1413 }
 0x188   : > { %v1421_v15 = vadd.f32 %v1420_v12, %v1414_v13 }
 0x18a   : > { %v1423_v16 = vsub.f32 %v1421_v15, %v1422_v14 }
 0x18c   : > { %v2150_v17 = vmax.f32 %v1423_v16, 0.0 }
 0x18e   : > { %1945 = vrsqrt.f32 %v2150_v17  ;;  %vm1427_vm7 = vcmp.eq.f32.partialorder %v2150_v17, inf  ;;  %vm1429_vm8 = vcmp.eq.f32.partialorder %v2150_v17, 0.0  ;;  %v1430_v41 = vand.u32 2147483648, %v2150_v17 }
 0x18f   : > { %v1944_v20 = vpop.eup %1943 }
 0x190   : > { %v695_v21 = vmul.f32 %v1944_v20, %v693_v10 }
 0x192   : > { %v697_v24 = vsel %vm696_vm5, %v693_v10, %v695_v21 }
 0x193   : > { %v700_v27 = vsel %vm698_vm6, %v699_v22, %v697_v24 }
 0x194   : > { %v2159_v33 = vsel %vm228_vm4, 1e+30, %v700_v27  ;;  %v711_v34 = vsel %vm228_vm4, %v700_v27, -1e+30  ;;  %v2170_v42 = vsel %vm680_vm3, %v700_v27, 0.0 }
 0x195   : > { %v713_v38 = vsel %vm680_vm3, %v711_v34, -inf  ;;  %v730_v39 = vadd.f32 0.2, %v711_v34  ;;  %v716_v40 = vsel %vm680_vm3, %v2159_v33, inf }
 0x196   : > { %714 = vmax.xlane.f32.xlu0 %v713_v38 }
 0x197   : > { %v734_v43 = vrot.slane %v730_v39, %v733_v23  ;;  %v759_v44 = vrot.slane %v730_v39, %v758_v25  ;;  %v784_v45 = vrot.slane %v730_v39, %v783_v26  ;;  %v809_v46 = vrot.slane %v730_v39, %v808_v30 }
 0x198   : > { %v834_v47 = vrot.slane %v730_v39, %v833_v31  ;;  %v859_v48 = vrot.slane %v730_v39, %v858_v32  ;;  %v884_v49 = vrot.slane %v730_v39, %v883_v36  ;;  %v2188_v50 = vrot.slane %v730_v39, %v908_v37 }
 0x199   : > { %v735_v51 = vsub.f32 %v734_v43, %v2159_v33  ;;  %v760_v52 = vsub.f32 %v759_v44, %v2159_v33  ;;  %v785_v53 = vsub.f32 %v784_v45, %v2159_v33  ;;  %v810_v54 = vsub.f32 %v809_v46, %v2159_v33 }
 0x19a   : > { %717 = vmin.xlane.f32.xlu0 %v716_v40  ;;  %v835_v55 = vsub.f32 %v834_v47, %v2159_v33  ;;  %v860_v56 = vsub.f32 %v859_v48, %v2159_v33  ;;  %v885_v57 = vsub.f32 %v884_v49, %v2159_v33  ;;  %v910_v58 = vsub.f32 %v2188_v50, %v2159_v33 }
 0x19b   : > { %v1946_v59 = vpop.eup %1945  ;;  %v2199_v60 = vmax.f32 %v735_v51, 0.0  ;;  %v2201_v61 = vmax.f32 %v760_v52, 0.0  ;;  %v2203_v62 = vmax.f32 %v785_v53, 0.0  ;;  %v2205_v63 = vmax.f32 %v810_v54, 0.0 }
 0x19c   : > { %v1426_v1 = vmul.f32 %v1946_v59, %v2150_v17  ;;  %v2208_v2 = vmax.f32 %v835_v55, 0.0  ;;  %v2210_v3 = vmax.f32 %v860_v56, 0.0  ;;  %v2212_v4 = vmax.f32 %v885_v57, 0.0 }
 0x19d   : > { %vm745_vm10 = vcmp.gt.f32.partialorder %v2199_v60, 0.0  ;;  %vm770_vm11 = vcmp.gt.f32.partialorder %v2201_v61, 0.0  ;;  %vm795_vm12 = vcmp.gt.f32.partialorder %v2203_v62, 0.0  ;;  %vm820_vm13 = vcmp.gt.f32.partialorder %v2205_v63, 0.0 }
 0x19e   : > { %v1428_v5 = vsel %vm1427_vm7, %v2150_v17, %v1426_v1  ;;  %v1787_v6 = vsel %vm745_vm10, 1.0, %v2013_v0  ;;  %v1788_v7 = vsel %vm770_vm11, 1.0, %v2013_v0  ;;  %v1789_v8 = vsel %vm795_vm12, 1.0, %v2013_v0 }
 0x19f   : > { %v2226_v9 = vsel %vm1429_vm8, %v1430_v41, %v1428_v5  ;;  %v748_v10 = vsel %vm680_vm3, %v1787_v6, 0.0  ;;  %v773_v11 = vsel %vm680_vm3, %v1788_v7, 0.0  ;;  %v798_v12 = vsel %vm680_vm3, %v1789_v8, 0.0 }
 0x1a0   : > { %v2233_v13 = vsel %vm961_vm9, 1e+30, %v2226_v9  ;;  %v1442_v14 = vsel %vm961_vm9, %v2226_v9, -1e+30  ;;  %v749_v15 = vrot.slane %v748_v10, 4  ;;  %v774_v16 = vrot.slane %v773_v11, 4 }
 0x1a1   : > { %v1447_v17 = vsel %vm680_vm3, %v2233_v13, inf  ;;  %v1444_v18 = vsel %vm680_vm3, %v1442_v14, -inf  ;;  %v2240_v19 = vadd.f32 0.2, %v1442_v14  ;;  %v799_v20 = vrot.slane %v798_v12, 4 }
 0x1a2   : > { %1448 = vmin.xlane.f32.xlu0 %v1447_v17  ;;  %1445 = vmax.xlane.f32.xlu1 %v1444_v18  ;;  %v750_v21 = vadd.f32 %v749_v15, %v748_v10  ;;  %v775_v22 = vadd.f32 %v774_v16, %v773_v11  ;;  %v1790_v24 = vsel %vm820_vm13, 1.0, %v2013_v0  ;;  %vm845_vm14 = vcmp.gt.f32.partialorder %v2208_v2, 0.0 }
 0x1a3   : > { %v800_v27 = vadd.f32 %v799_v20, %v798_v12  ;;  %v823_v29 = vsel %vm680_vm3, %v1790_v24, 0.0  ;;  %v1791_v34 = vsel %vm845_vm14, 1.0, %v2013_v0  ;;  %vm870_vm15 = vcmp.gt.f32.partialorder %v2210_v3, 0.0 }
 0x1a4   : > { %v751_v35 = vrot.slane %v750_v21, 2  ;;  %v776_v38 = vrot.slane %v775_v22, 2  ;;  %v824_v39 = vrot.slane %v823_v29, 4  ;;  %v848_v40 = vsel %vm680_vm3, %v1791_v34, 0.0 }
 0x1a5   : > { %v801_v41 = vrot.slane %v800_v27, 2  ;;  %v849_v43 = vrot.slane %v848_v40, 4  ;;  %v1792_v44 = vsel %vm870_vm15, 1.0, %v2013_v0  ;;  %vm895_vm0 = vcmp.gt.f32.partialorder %v2212_v4, 0.0 }
 0x1a6   : > { %v752_v45 = vadd.f32 %v751_v35, %v750_v21  ;;  %v777_v46 = vadd.f32 %v776_v38, %v775_v22  ;;  %v825_v47 = vadd.f32 %v824_v39, %v823_v29  ;;  %v873_v48 = vsel %vm680_vm3, %v1792_v44, 0.0 }
 0x1a7   : > { %v802_v49 = vadd.f32 %v801_v41, %v800_v27  ;;  %v850_v51 = vadd.f32 %v849_v43, %v848_v40  ;;  %v874_v52 = vrot.slane %v873_v48, 4  ;;  %v1793_v53 = vsel %vm895_vm0, 1.0, %v2013_v0 }
 0x1a8   : > { %v753_v54 = vrot.slane %v752_v45, 1  ;;  %v778_v55 = vrot.slane %v777_v46, 1  ;;  %v826_v56 = vrot.slane %v825_v47, 2  ;;  %v898_v57 = vsel %vm680_vm3, %v1793_v53, 0.0 }
 0x1a9   : > { %v803_v59 = vrot.slane %v802_v49, 1  ;;  %v851_v1 = vrot.slane %v850_v51, 2  ;;  %v875_v5 = vadd.f32 %v874_v52, %v873_v48  ;;  %v899_v6 = vrot.slane %v898_v57, 4 }
 0x1aa   : > { %v754_v7 = vadd.f32 %v753_v54, %v752_v45  ;;  %v779_v8 = vadd.f32 %v778_v55, %v777_v46  ;;  %v827_v10 = vadd.f32 %v826_v56, %v825_v47  ;;  %v2258_v11 = vmax.f32 %v910_v58, 0.0 }
 0x1ab   : > { %v804_v12 = vadd.f32 %v803_v59, %v802_v49  ;;  %v852_v14 = vadd.f32 %v851_v1, %v850_v51  ;;  %v876_v15 = vrot.slane %v875_v5, 2  ;;  %v900_v16 = vadd.f32 %v899_v6, %v898_v57 }
 0x1ac   : > { %v780_v17 = vadd.f32 %v779_v8, %v754_v7  ;;  %v828_v18 = vrot.slane %v827_v10, 1  ;;  %vm920_vm1 = vcmp.gt.f32.partialorder %v2258_v11, 0.0  ;;  %v1465_v20 = vrot.slane %v2240_v19, %v733_v23 }
 0x1ad   : > { %v853_v21 = vrot.slane %v852_v14, 1  ;;  %v877_v22 = vadd.f32 %v876_v15, %v875_v5  ;;  %v901_v24 = vrot.slane %v900_v16, 2  ;;  %v1794_v27 = vsel %vm920_vm1, 1.0, %v2013_v0 }
 0x1ae   : > { %v805_v33 = vadd.f32 %v804_v12, %v780_v17  ;;  %v829_v50 = vadd.f32 %v828_v18, %v827_v10  ;;  %v923_v58 = vsel %vm680_vm3, %v1794_v27, 0.0  ;;  %v1466_v29 = vsub.f32 %v1465_v20, %v2233_v13 }
 0x1af   : > { %v854_v34 = vadd.f32 %v853_v21, %v852_v14  ;;  %v878_v35 = vrot.slane %v877_v22, 1  ;;  %v902_v38 = vadd.f32 %v901_v24, %v900_v16  ;;  %v924_v39 = vrot.slane %v923_v58, 4 }
 0x1b0   : > { %v830_v40 = vadd.f32 %v829_v50, %v805_v33  ;;  %v2267_v41 = vmax.f32 %v1466_v29, 0.0  ;;  %v1490_v23 = vrot.slane %v2240_v19, %v758_v25  ;;  %v1515_v43 = vrot.slane %v2240_v19, %v783_v26 }
 0x1b1   : > { %v879_v44 = vadd.f32 %v878_v35, %v877_v22  ;;  %v903_v45 = vrot.slane %v902_v38, 1  ;;  %v925_v46 = vadd.f32 %v924_v39, %v923_v58  ;;  %v1540_v47 = vrot.slane %v2240_v19, %v808_v30 }
 0x1b2   : > { %v855_v48 = vadd.f32 %v854_v34, %v830_v40  ;;  %vm1476_vm2 = vcmp.gt.f32.partialorder %v2267_v41, 0.0  ;;  %v1491_v49 = vsub.f32 %v1490_v23, %v2233_v13  ;;  %v1516_v51 = vsub.f32 %v1515_v43, %v2233_v13 }
 0x1b3   : > { %v904_v52 = vadd.f32 %v903_v45, %v902_v38  ;;  %v926_v25 = vrot.slane %v925_v46, 2  ;;  %v1799_v53 = vsel %vm1476_vm2, 1.0, %v2013_v0  ;;  %v1541_v26 = vsub.f32 %v1540_v47, %v2233_v13 }
 0x1b4   : > { %v880_v54 = vadd.f32 %v879_v44, %v855_v48  ;;  %v1479_v55 = vsel %vm680_vm3, %v1799_v53, 0.0  ;;  %v2284_v56 = vmax.f32 %v1491_v49, 0.0  ;;  %v2286_v57 = vmax.f32 %v1516_v51, 0.0 }
 0x1b5   : > { %v927_v30 = vadd.f32 %v926_v25, %v925_v46  ;;  %v1480_v59 = vrot.slane %v1479_v55, 4  ;;  %v2288_v1 = vmax.f32 %v1541_v26, 0.0  ;;  %v1565_v5 = vrot.slane %v2240_v19, %v833_v31 }
 0x1b6   : > { %v905_v6 = vadd.f32 %v904_v52, %v880_v54  ;;  %vm1501_vm4 = vcmp.gt.f32.partialorder %v2284_v56, 0.0  ;;  %vm1526_vm5 = vcmp.gt.f32.partialorder %v2286_v57, 0.0  ;;  %v1590_v7 = vrot.slane %v2240_v19, %v858_v32 }
 0x1b7   : > { %v928_v8 = vrot.slane %v927_v30, 1  ;;  %v1481_v10 = vadd.f32 %v1480_v59, %v1479_v55  ;;  %v1800_v12 = vsel %vm1501_vm4, 1.0, %v2013_v0  ;;  %v1801_v14 = vsel %vm1526_vm5, 1.0, %v2013_v0 }
 0x1b8   : > { %v1504_v15 = vsel %vm680_vm3, %v1800_v12, 0.0  ;;  %v1529_v16 = vsel %vm680_vm3, %v1801_v14, 0.0  ;;  %vm1551_vm6 = vcmp.gt.f32.partialorder %v2288_v1, 0.0  ;;  %v1566_v31 = vsub.f32 %v1565_v5, %v2233_v13 }
 0x1b9   : > { %v929_v17 = vadd.f32 %v928_v8, %v927_v30  ;;  %v1482_v18 = vrot.slane %v1481_v10, 2  ;;  %v1505_v20 = vrot.slane %v1504_v15, 4  ;;  %v1530_v21 = vrot.slane %v1529_v16, 4 }
 0x1ba   : > { %v1802_v32 = vsel %vm1551_vm6, 1.0, %v2013_v0  ;;  %v2305_v22 = vmax.f32 %v1566_v31, 0.0  ;;  %v1591_v24 = vsub.f32 %v1590_v7, %v2233_v13  ;;  %v1615_v27 = vrot.slane %v2240_v19, %v883_v36 }
 0x1bb   : > { %v930_v33 = vadd.f32 %v929_v17, %v905_v6  ;;  %v1483_v50 = vadd.f32 %v1482_v18, %v1481_v10  ;;  %v1506_v58 = vadd.f32 %v1505_v20, %v1504_v15  ;;  %v1531_v29 = vadd.f32 %v1530_v21, %v1529_v16 }
 0x1bc   : > { %v1554_v34 = vsel %vm680_vm3, %v1802_v32, 0.0  ;;  %vm1576_vm7 = vcmp.gt.f32.partialorder %v2305_v22, 0.0  ;;  %v2313_v35 = vmax.f32 %v1591_v24, 0.0  ;;  %v1616_v38 = vsub.f32 %v1615_v27, %v2233_v13 }
 0x1bd   : > { %v934_v39 = vsel %vm680_vm3, %v930_v33, 0.0  ;;  %v1484_v40 = vrot.slane %v1483_v50, 1  ;;  %v1507_v23 = vrot.slane %v1506_v58, 2  ;;  %v1532_v43 = vrot.slane %v1531_v29, 2 }
 0x1be   : > { %935 = vadd.xlane.f32.xlu0 %v934_v39  ;;  %v1555_v44 = vrot.slane %v1554_v34, 4  ;;  %v1803_v36 = vsel %vm1576_vm7, 1.0, %v2013_v0  ;;  %vm1601_vm8 = vcmp.gt.f32.partialorder %v2313_v35, 0.0  ;;  %v2319_v45 = vmax.f32 %v1616_v38, 0.0 }
 0x1bf   : > { %v1485_v46 = vadd.f32 %v1484_v40, %v1483_v50  ;;  %v1508_v47 = vadd.f32 %v1507_v23, %v1506_v58  ;;  %v1533_v48 = vadd.f32 %v1532_v43, %v1531_v29  ;;  %v1579_v49 = vsel %vm680_vm3, %v1803_v36, 0.0 }
 0x1c0   : > { %v1556_v51 = vadd.f32 %v1555_v44, %v1554_v34  ;;  %v1580_v52 = vrot.slane %v1579_v49, 4  ;;  %v1804_v25 = vsel %vm1601_vm8, 1.0, %v2013_v0  ;;  %vm1626_vm9 = vcmp.gt.f32.partialorder %v2319_v45, 0.0 }
 0x1c1   : > { %v1509_v53 = vrot.slane %v1508_v47, 1  ;;  %v1534_v26 = vrot.slane %v1533_v48, 1  ;;  %v1604_v54 = vsel %vm680_vm3, %v1804_v25, 0.0  ;;  %v1805_v55 = vsel %vm1626_vm9, 1.0, %v2013_v0 }
 0x1c2   : > { %v1557_v30 = vrot.slane %v1556_v51, 2  ;;  %v1581_v59 = vadd.f32 %v1580_v52, %v1579_v49  ;;  %v1605_v5 = vrot.slane %v1604_v54, 4  ;;  %v1629_v6 = vsel %vm680_vm3, %v1805_v55, 0.0 }
 0x1c3   : > { %v1510_v7 = vadd.f32 %v1509_v53, %v1508_v47  ;;  %v1535_v8 = vadd.f32 %v1534_v26, %v1533_v48  ;;  %v1630_v10 = vrot.slane %v1629_v6, 4  ;;  %v1640_v12 = vrot.slane %v2240_v19, %v908_v37 }
 0x1c4   : > { %v1558_v14 = vadd.f32 %v1557_v30, %v1556_v51  ;;  %v1582_v15 = vrot.slane %v1581_v59, 2  ;;  %v1606_v16 = vadd.f32 %v1605_v5, %v1604_v54  ;;  %v2332_v31 = vsel %vm680_vm3, %v2226_v9, 0.0 }
 0x1c5   : > { %v1511_v17 = vadd.f32 %v1510_v7, %v1485_v46  ;;  %v1631_v18 = vadd.f32 %v1630_v10, %v1629_v6  ;;  %v1641_v20 = vsub.f32 %v1640_v12, %v2233_v13  ;;  %v737_v21 = vsel %vm680_vm3, %v2199_v60, 0.0 }
 0x1c6   : > { %v1559_v32 = vrot.slane %v1558_v14, 1  ;;  %v1583_v24 = vadd.f32 %v1582_v15, %v1581_v59  ;;  %v1607_v27 = vrot.slane %v1606_v16, 2  ;;  %v738_v28 = vrot.slane %v737_v21, 4 }
 0x1c7   : > { %v1536_v33 = vadd.f32 %v1535_v8, %v1511_v17  ;;  %v1632_v37 = vrot.slane %v1631_v18, 2  ;;  %v2337_v19 = vmax.f32 %v1641_v20, 0.0  ;;  %v762_v50 = vsel %vm680_vm3, %v2201_v61, 0.0 }
 0x1c8   : > { %v1560_v9 = vadd.f32 %v1559_v32, %v1558_v14  ;;  %v1584_v58 = vrot.slane %v1583_v24, 1  ;;  %v1608_v29 = vadd.f32 %v1607_v27, %v1606_v16  ;;  %v739_v34 = vadd.f32 %v738_v28, %v737_v21 }
 0x1c9   : > { %v1633_v38 = vadd.f32 %v1632_v37, %v1631_v18  ;;  %vm1651_vm10 = vcmp.gt.f32.partialorder %v2337_v19, 0.0  ;;  %v763_v13 = vrot.slane %v762_v50, 4  ;;  %v787_v60 = vsel %vm680_vm3, %v2203_v62, 0.0 }
 0x1ca   : > { %v1561_v39 = vadd.f32 %v1560_v9, %v1536_v33  ;;  %v1585_v40 = vadd.f32 %v1584_v58, %v1583_v24  ;;  %v1609_v23 = vrot.slane %v1608_v29, 1  ;;  %v1806_v43 = vsel %vm1651_vm10, 1.0, %v2013_v0 }
 0x1cb   : > { %v1634_v44 = vrot.slane %v1633_v38, 1  ;;  %v1654_v36 = vsel %vm680_vm3, %v1806_v43, 0.0  ;;  %v740_v61 = vrot.slane %v739_v34, 2  ;;  %v764_v46 = vadd.f32 %v763_v13, %v762_v50 }
 0x1cc   : > { %v1586_v47 = vadd.f32 %v1585_v40, %v1561_v39  ;;  %v1610_v48 = vadd.f32 %v1609_v23, %v1608_v29  ;;  %v1655_v49 = vrot.slane %v1654_v36, 4  ;;  %v788_v51 = vrot.slane %v787_v60, 4 }
 0x1cd   : > { %v1635_v52 = vadd.f32 %v1634_v44, %v1633_v38  ;;  %v741_v25 = vadd.f32 %v740_v61, %v739_v34  ;;  %v765_v53 = vrot.slane %v764_v46, 2  ;;  %v812_v62 = vsel %vm680_vm3, %v2205_v63, 0.0 }
 0x1ce   : > { %v1611_v26 = vadd.f32 %v1610_v48, %v1586_v47  ;;  %v1656_v54 = vadd.f32 %v1655_v49, %v1654_v36  ;;  %v789_v55 = vadd.f32 %v788_v51, %v787_v60  ;;  %v813_v30 = vrot.slane %v812_v62, 4 }
 0x1cf   : > { %v742_v0 = vrot.slane %v741_v25, 1  ;;  %v766_v59 = vadd.f32 %v765_v53, %v764_v46  ;;  %v837_v5 = vsel %vm680_vm3, %v2208_v2, 0.0  ;;  %v862_v6 = vsel %vm680_vm3, %v2210_v3, 0.0 }
 0x1d0   : > { %v1636_v7 = vadd.f32 %v1635_v52, %v1611_v26  ;;  %v1657_v8 = vrot.slane %v1656_v54, 2  ;;  %v790_v10 = vrot.slane %v789_v55, 2  ;;  %v814_v12 = vadd.f32 %v813_v30, %v812_v62 }
 0x1d1   : > { %v743_v14 = vadd.f32 %v742_v0, %v741_v25  ;;  %v767_v15 = vrot.slane %v766_v59, 1  ;;  %v838_v16 = vrot.slane %v837_v5, 4  ;;  %v863_v63 = vrot.slane %v862_v6, 4 }
 0x1d2   : > { %v1658_v17 = vadd.f32 %v1657_v8, %v1656_v54  ;;  %v791_v18 = vadd.f32 %v790_v10, %v789_v55  ;;  %v815_v20 = vrot.slane %v814_v12, 2  ;;  %v887_v21 = vsel %vm680_vm3, %v2212_v4, 0.0 }
 0x1d3   : > { %v768_v32 = vadd.f32 %v767_v15, %v766_v59  ;;  %v839_v24 = vadd.f32 %v838_v16, %v837_v5  ;;  %v864_v2 = vadd.f32 %v863_v63, %v862_v6  ;;  %v888_v27 = vrot.slane %v887_v21, 4 }
 0x1d4   : > { %v1659_v28 = vrot.slane %v1658_v17, 1  ;;  %v792_v3 = vrot.slane %v791_v18, 1  ;;  %v816_v33 = vadd.f32 %v815_v20, %v814_v12  ;;  %v912_v37 = vsel %vm680_vm3, %v2258_v11, 0.0 }
 0x1d5   : > { %v769_v50 = vadd.f32 %v768_v32, %v743_v14  ;;  %v840_v9 = vrot.slane %v839_v24, 2  ;;  %v865_v58 = vrot.slane %v864_v2, 2  ;;  %v889_v29 = vadd.f32 %v888_v27, %v887_v21 }
 0x1d6   : > { %v1660_v34 = vadd.f32 %v1659_v28, %v1658_v17  ;;  %v793_v38 = vadd.f32 %v792_v3, %v791_v18  ;;  %v817_v13 = vrot.slane %v816_v33, 1  ;;  %v913_v60 = vrot.slane %v912_v37, 4 }
 0x1d7   : > { %v841_v39 = vadd.f32 %v840_v9, %v839_v24  ;;  %v866_v4 = vadd.f32 %v865_v58, %v864_v2  ;;  %v890_v40 = vrot.slane %v889_v29, 2  ;;  %v1468_v23 = vsel %vm680_vm3, %v2267_v41, 0.0 }
 0x1d8   : > { %v1661_v43 = vadd.f32 %v1660_v34, %v1636_v7  ;;  %v794_v44 = vadd.f32 %v793_v38, %v769_v50  ;;  %v818_v36 = vadd.f32 %v817_v13, %v816_v33  ;;  %v914_v61 = vadd.f32 %v913_v60, %v912_v37 }
 0x1d9   : > { %v842_v46 = vrot.slane %v841_v39, 1  ;;  %v867_v11 = vrot.slane %v866_v4, 1  ;;  %v891_v47 = vadd.f32 %v890_v40, %v889_v29  ;;  %v1469_v48 = vrot.slane %v1468_v23, 4 }
 0x1da   : > { %v1665_v49 = vsel %vm680_vm3, %v1661_v43, 0.0  ;;  %v819_v51 = vadd.f32 %v818_v36, %v794_v44  ;;  %v915_v52 = vrot.slane %v914_v61, 2  ;;  %v1493_v25 = vsel %vm680_vm3, %v2284_v56, 0.0 }
 0x1db   : > { %1666 = vadd.xlane.f32.xlu0 %v1665_v49  ;;  %v843_v53 = vadd.f32 %v842_v46, %v841_v39  ;;  %v868_v62 = vadd.f32 %v867_v11, %v866_v4  ;;  %v892_v26 = vrot.slane %v891_v47, 1  ;;  %v1470_v41 = vadd.f32 %v1469_v48, %v1468_v23 }
 0x1dc   : > { %v916_v54 = vadd.f32 %v915_v52, %v914_v61  ;;  %v1494_v55 = vrot.slane %v1493_v25, 4  ;;  %v1518_v30 = vsel %vm680_vm3, %v2286_v57, 0.0  ;;  %v1543_v0 = vsel %vm680_vm3, %v2288_v1, 0.0 }
 0x1dd   : > { %v844_v59 = vadd.f32 %v843_v53, %v819_v51  ;;  %v893_v5 = vadd.f32 %v892_v26, %v891_v47  ;;  %v1471_v6 = vrot.slane %v1470_v41, 2  ;;  %v1519_v7 = vrot.slane %v1518_v30, 4 }
 0x1de   : > { %v917_v8 = vrot.slane %v916_v54, 1  ;;  %v1495_v10 = vadd.f32 %v1494_v55, %v1493_v25  ;;  %v1544_v56 = vrot.slane %v1543_v0, 4  ;;  %v1568_v12 = vsel %vm680_vm3, %v2305_v22, 0.0 }
 0x1df   : > { %702 = vadd.xlane.f32.xlu0 %v2170_v42  ;;  %v869_v14 = vadd.f32 %v868_v62, %v844_v59  ;;  %v1472_v15 = vadd.f32 %v1471_v6, %v1470_v41  ;;  %v1520_v16 = vadd.f32 %v1519_v7, %v1518_v30  ;;  %v1569_v63 = vrot.slane %v1568_v12, 4 }
 0x1e0   : > { %v918_v57 = vadd.f32 %v917_v8, %v916_v54  ;;  %v1496_v17 = vrot.slane %v1495_v10, 2  ;;  %v1545_v18 = vadd.f32 %v1544_v56, %v1543_v0  ;;  %v1593_v1 = vsel %vm680_vm3, %v2313_v35, 0.0 }
 0x1e1   : > { %v894_v20 = vadd.f32 %v893_v5, %v869_v14  ;;  %v1473_v21 = vrot.slane %v1472_v15, 1  ;;  %v1521_v32 = vrot.slane %v1520_v16, 2  ;;  %v1570_v24 = vadd.f32 %v1569_v63, %v1568_v12 }
 0x1e2   : > { %v1497_v2 = vadd.f32 %v1496_v17, %v1495_v10  ;;  %v1546_v27 = vrot.slane %v1545_v18, 2  ;;  %v1594_v28 = vrot.slane %v1593_v1, 4  ;;  %v1618_v42 = vsel %vm680_vm3, %v2319_v45, 0.0 }
 0x1e3   : > { %1433 = vadd.xlane.f32.xlu0 %v2332_v31  ;;  %v919_v22 = vadd.f32 %v918_v57, %v894_v20  ;;  %v1474_v3 = vadd.f32 %v1473_v21, %v1472_v15  ;;  %v1522_v33 = vadd.f32 %v1521_v32, %v1520_v16  ;;  %v1571_v37 = vrot.slane %v1570_v24, 2 }
 0x1e4   : > { %v1498_v50 = vrot.slane %v1497_v2, 1  ;;  %v1547_v9 = vadd.f32 %v1546_v27, %v1545_v18  ;;  %v1595_v58 = vadd.f32 %v1594_v28, %v1593_v1  ;;  %v1619_v35 = vrot.slane %v1618_v42, 4 }
 0x1e5   : > { %v931_v29 = vsel %vm680_vm3, %v919_v22, 0.0  ;;  %v1523_v34 = vrot.slane %v1522_v33, 1  ;;  %v1572_v38 = vadd.f32 %v1571_v37, %v1570_v24  ;;  %v1643_v13 = vsel %vm680_vm3, %v2337_v19, 0.0 }
 0x1e6   : > { %v1499_v60 = vadd.f32 %v1498_v50, %v1497_v2  ;;  %v1548_v39 = vrot.slane %v1547_v9, 1  ;;  %v1596_v45 = vrot.slane %v1595_v58, 2  ;;  %v1620_v4 = vadd.f32 %v1619_v35, %v1618_v42 }
 0x1e7   : > { %932 = vadd.xlane.f32.xlu0 %v931_v29  ;;  %v1524_v31 = vadd.f32 %v1523_v34, %v1522_v33  ;;  %v1644_v40 = vrot.slane %v1643_v13, 4  ;;  %v1573_v43 = vrot.slane %v1572_v38, 1  ;;  %vm942_vm11 = vcmask 7168  }
 0x1e8   : > { %v1500_v23 = vadd.f32 %v1499_v60, %v1474_v3  ;;  %v1597_v44 = vadd.f32 %v1596_v45, %v1595_v58  ;;  %v1621_v36 = vrot.slane %v1620_v4, 2  ;;  %v1549_v11 = vadd.f32 %v1548_v39, %v1547_v9 }
 0x1e9   : > { %v1645_v61 = vadd.f32 %v1644_v40, %v1643_v13  ;;  %v1574_v52 = vadd.f32 %v1573_v43, %v1572_v38  ;;  %vm944_vm12 = vcmask 15360   ;;  %vm946_vm13 = vcmask 23552  }
 0x1ea   : > { %v1525_v46 = vadd.f32 %v1524_v31, %v1500_v23  ;;  %v1598_v47 = vrot.slane %v1597_v44, 1  ;;  %v1622_v48 = vadd.f32 %v1621_v36, %v1620_v4  ;;  %vm1676_vm14 = vcmask 24576  }
 0x1eb   : > { %v1646_v49 = vrot.slane %v1645_v61, 2 }
 0x1ec   : > { %v1550_v51 = vadd.f32 %v1549_v11, %v1525_v46  ;;  %v1623_v19 = vrot.slane %v1622_v48, 1  ;;  %v1599_v62 = vadd.f32 %v1598_v47, %v1597_v44 }
 0x1ed   : > { %v1647_v25 = vadd.f32 %v1646_v49, %v1645_v61 }
 0x1ee   : > { %v1575_v53 = vadd.f32 %v1574_v52, %v1550_v51  ;;  %v1624_v54 = vadd.f32 %v1623_v19, %v1622_v48 }
 0x1ef   : > { %v1648_v26 = vrot.slane %v1647_v25, 1 }
 0x1f0   : > { %v1600_v41 = vadd.f32 %v1599_v62, %v1575_v53 }
 0x1f1   : > { %v1649_v30 = vadd.f32 %v1648_v26, %v1647_v25 }
 0x1f2   : > { %v1625_v55 = vadd.f32 %v1624_v54, %v1600_v41 }
 0x1f4   : > { %v1650_v0 = vadd.f32 %v1649_v30, %v1625_v55 }
 0x1f6   : > { %v1662_v59 = vsel %vm680_vm3, %v1650_v0, 0.0 }
 0x1f7   : > { %1663 = vadd.xlane.f32.xlu0 %v1662_v59 }
 0x21f   : > { %v715_v5 = vpop.xlane.xlu0 %714 }
 0x220   : > { %v719_v7 = vadd.f32 0.2, %v715_v5 }
 0x223   : > { %v718_v6 = vpop.xlane.xlu0 %717 }
 0x224   : > { %v720_v8 = vsub.f32 %v719_v7, %v718_v6 }
 0x226   : > { %v721_v10 = vmax.f32 %v720_v8, 0.0 }
 0x228   : > { %v723_v14 = vrot.slane %v721_v10, 4 }
 0x22a   : > { %v724_v57 = vadd.f32 %v723_v14, %v721_v10 }
 0x22b   : > { %v1449_v56 = vpop.xlane.xlu0 %1448  ;;  %v1446_v12 = vpop.xlane.xlu1 %1445 }
 0x22c   : > { %v1450_v16 = vadd.f32 0.2, %v1446_v12  ;;  %v725_v18 = vrot.slane %v724_v57, 2 }
 0x22e   : > { %v1451_v17 = vsub.f32 %v1450_v16, %v1449_v56  ;;  %v726_v21 = vadd.f32 %v725_v18, %v724_v57 }
 0x230   : > { %v1452_v20 = vmax.f32 %v1451_v17, 0.0  ;;  %v727_v28 = vrot.slane %v726_v21, 1 }
 0x232   : > { %v1454_v2 = vrot.slane %v1452_v20, 4  ;;  %v728_v35 = vadd.f32 %v727_v28, %v726_v21 }
 0x234   : > { %v1455_v37 = vadd.f32 %v1454_v2, %v1452_v20  ;;  %v729_v4 = vmul.f32 0.125, %v728_v35 }
 0x236   : > { %v1456_v60 = vrot.slane %v1455_v37, 2 }
 0x238   : > { %v1457_v23 = vadd.f32 %v1456_v60, %v1455_v37 }
 0x23a   : > { %v1458_v46 = vrot.slane %v1457_v23, 1 }
 0x23c   : > { %v1459_v48 = vadd.f32 %v1458_v46, %v1457_v23 }
 0x23e   : > { %v1460_v19 = vmul.f32 0.125, %v1459_v48 }
 0x247   : > { %v936_v15 = vpop.xlane.xlu0 %935 }
 0x248   : > { %v938_v63 = vmax.f32 %v936_v15, 1.0  ;;  %vm937_vm3 = vcmp.gt.f32.partialorder %v936_v15, 0.0 }
 0x24a   : > { %1947 = vrcp.f32 %v938_v63 }
 0x257   : > { %v1948_v58 = vpop.eup %1947 }
 0x264   : > { %v1667_v1 = vpop.xlane.xlu0 %1666 }
 0x265   : > { %v1669_v22 = vmax.f32 %v1667_v1, 1.0  ;;  %vm1668_vm15 = vcmp.gt.f32.partialorder %v1667_v1, 0.0 }
 0x267   : > { %1949 = vrcp.f32 %v1669_v22 }
 0x268   : > { %v703_v32 = vpop.xlane.xlu0 %702 }
 0x269   : > { %v704_v24 = vrot.slane %v703_v32, 4 }
 0x26b   : > { %v705_v27 = vadd.f32 %v704_v24, %v703_v32 }
 0x26c   : > { %v1434_v42 = vpop.xlane.xlu0 %1433 }
 0x26d   : > { %v706_v3 = vrot.slane %v705_v27, 2  ;;  %v1435_v33 = vrot.slane %v1434_v42, 4 }
 0x26f   : > { %v707_v50 = vadd.f32 %v706_v3, %v705_v27  ;;  %v1436_v9 = vadd.f32 %v1435_v33, %v1434_v42 }
 0x270   : > { %v933_v29 = vpop.xlane.xlu0 %932 }
 0x271   : > { %v708_v34 = vrot.slane %v707_v50, 1  ;;  %v1437_v38 = vrot.slane %v1436_v9, 2  ;;  %v940_v13 = vmul.f32 %v1948_v58, %v933_v29 }
 0x273   : > { %v709_v39 = vadd.f32 %v708_v34, %v707_v50  ;;  %v941_v45 = vsel %vm937_vm3, %v940_v13, 0.0  ;;  %v1438_v40 = vadd.f32 %v1437_v38, %v1436_v9 }
 0x274   : > { %v943_v43 = vsel %vm942_vm11, %v941_v45, %v729_v4  ;;  %v1950_v47 = vpop.eup %1949 }
 0x275   : > { %v710_v31 = vmul.f32 0.015625, %v709_v39  ;;  %v1439_v61 = vrot.slane %v1438_v40, 1 }
 0x277   : > { %v945_v44 = vsel %vm944_vm12, %v943_v43, %v710_v31  ;;  %v1440_v11 = vadd.f32 %v1439_v61, %v1438_v40 }
 0x278   : > { %v947_v36 = vsel %vm946_vm13, %v945_v44, %v936_v15 }
 0x279   : > { %1677 = vst.msk [vmem:[%s194_s10] sm:$0x1] %vm1676_vm14, %v947_v36  ;;  %v1441_v51 = vmul.f32 0.015625, %v1440_v11 }
 0x280   : > { %v1664_v49 = vpop.xlane.xlu0 %1663 }
 0x281   : > { %v1671_v52 = vmul.f32 %v1950_v47, %v1664_v49 }
 0x283   : > { %v1672_v25 = vsel %vm1668_vm15, %v1671_v52, 0.0 }
 0x284   : > { %v1673_v53 = vsel %vm942_vm11, %v1672_v25, %v1460_v19 }
 0x285   : > { %v1674_v62 = vsel %vm944_vm12, %v1673_v53, %v1441_v51 }
 0x286   : > { %v1675_v26 = vsel %vm946_vm13, %v1674_v62, %v1667_v1 }
 0x287   : > { %1678 = vst.msk [vmem:[%s194_s10 + $0x1] sm:$0x1] %vm1676_vm14, %v1675_v26 }
 0x288   : > { %1964 = shalt.err (!%p1961_p3)
}
 0x289   : > { %s1965_s29 = scalar_lea.hbm %s2389_s24, 32  ;;  %s1969_s5 = scalar_lea.hbm %s2441_s3, 64 }
 0x28a   : > { %p1966_p4 = scmp.ne.s32.totalorder %s2389_s24, %s1965_s29  ;;  %p1970_p9 = scmp.lt.s32.totalorder %s2389_s24, %s2441_s3 }
 0x28b   : > { %p1971_p10 = scmp.lt.s32.totalorder %s1969_s5, %s1965_s29 }
 0x28c   : > { %p1967_p7 = pnand %p1966_p4, %p2077_p5 }
 0x28d   : > { %p1972_p11 = por %p1971_p10, %p1970_p9 }
 0x28e   : > { %p1968_p8 = pneg %p1967_p7 }
 0x290   : > { %p1973_p12 = pnand %p1972_p11, %p1968_p8 }
 0x292   : > { %1976 = shalt.err (!%p1973_p12)
}
 0x293   : > { %s2017_s8 = smov 16   ;;  %s2018_s9 = smov 1  }
 0x294   : > { %1897 = dma.vmem_to_hbm [thread:$0]  (%p2077_p5), %s2391_s17, 32, %s2389_s24, %s2398_s16, %s2017_s8, %s2017_s8, %s2018_s9  }
 0x295 PF: > { %p1903_p13 = scmp.ge.s32.totalorder %s2011_s15, 2  ;;  %s1708_s10 = sand.u32 1, %s1999_s12  }
 0x296   : > { %s1709_s11 = scalar_lea.sflag [#allocation3], %s1708_s10 }
 0x297   : > { %p1900_p0 = pnand %p1903_p13, %p2081_p6 }
 0x299   : > { %p1901_p1 = pneg %p1900_p0 }
 0x29b   : > { %1994 = dma.done.wait (%p1901_p1), %s1709_s11, 32  }
 0x29c   : > { %1996 = vsyncadd (%p1901_p1), %s1709_s11, 4294967264  ;;  %p13_p2 = scmp.ge.s32.totalorder %s2064_s18, 4   ;;  %s2444_s12 = smov %s2003_s13 }
 0x29d   : > { %s2445_s13 = smov %s2007_s14  ;;  %s2446_s14 = smov %s2075_s21 }
 0x29e   : > { %s2447_s15 = smov %s2064_s18  ;;  %15 = sbr.rel (!%p13_p2) target bundleno = 3 (0x3), region = 76 }
 0x2a3   :  { %1714 = vsyncpa [#allocation3], 1 }
 0x2a4   :  { %1716 = vsyncpa [#allocation3 + $0x1], 1 }

</bundles_post_ra>
